<compile_context>
chip_gen: v6e
topology: v6e:2x2x1
jax: 0.10.0
libtpu: 0.0.40
codegen_flags: <defaults>
</compile_context>

<pallas_src>
import functools

import jax
import jax.numpy as jnp
from jax.experimental import pallas as pl
from jax.experimental.pallas import tpu as pltpu


# ----------------------------------------------------------------------------
# Pallas kernel: fused SharedMLP (2 x [1x1 conv + folded BN + ReLU]) + max over nsample
# ----------------------------------------------------------------------------
def _sa_mlp_maxpool_kernel(feat_ref, w1_ref, w2_ref, b2_ref, out_ref, *, nsample, tp):
    # feat_ref: (c_in, nsample*tp) bf16   (point tile on lanes, sample-major slabs)
    # w1_ref:   (h1, c_in)  bf16  (BN1 + bias folded; bias rides the ones channel)
    # w2_ref:   (c_out, h1) bf16  (BN2 folded)
    # b2_ref:   (c_out, 1)  f32
    # out_ref:  (c_out, tp) bf16
    x = feat_ref[...]
    h = jnp.dot(w1_ref[...], x, preferred_element_type=jnp.float32)      # (h1, ns*tp)
    h = jnp.maximum(h, 0.0).astype(w2_ref.dtype)
    y = jnp.dot(w2_ref[...], h, preferred_element_type=jnp.float32)      # (c_out, ns*tp)

    # Max-pool over nsample: pairwise tree over static tp-aligned lane slabs.
    n = nsample
    while n > 1:
        n //= 2
        y = jnp.maximum(y[:, : n * tp], y[:, n * tp:])                   # (c_out, n*tp)

    # Layer-2 bias + ReLU hoisted out of the pooled set:
    #   max_s relu(y_s + b2) == relu(max_s y_s + b2)   (both monotone).
    out_ref[...] = jnp.maximum(y + b2_ref[...], 0.0).astype(out_ref.dtype)


def _pick_point_tile(npoint):
    """Explicit point-axis tile tunable.

    256 keeps the f32 (c_out, nsample*TP) intermediate small (vreg/VMEM pressure,
    esp. v5e's single store slot) while still giving >= 2 grid steps along npoint for
    npoint >= 512; 128 for smaller npoint; otherwise one full (possibly masked) tile.
    """
    for tp in (256, 128):
        if npoint % tp == 0:
            return tp
    return npoint


def sa_mlp_maxpool(grouped, w1, w2, b2, *, nsample, tp):
    """Fused SharedMLP + max-pool for all groupers in one pallas_call.

    grouped: (G, B, npoint//tp, c_in, nsample*tp) bf16
    w1:      (G, h1, c_in)  bf16     w2: (G, c_out, h1) bf16     b2: (G, c_out, 1) f32
    returns  (B, G*c_out, npoint) bf16   (channel slabs in grouper order == torch.cat)
    """
    G, B, npb, c_in, lane = grouped.shape
    assert lane == nsample * tp and nsample & (nsample - 1) == 0
    h1 = w1.shape[1]
    c_out = w2.shape[1]
    npoint = npb * tp
    kernel = functools.partial(_sa_mlp_maxpool_kernel, nsample=nsample, tp=tp)

    return pl.pallas_call(
        kernel,
        out_shape=jax.ShapeDtypeStruct((B, G * c_out, npoint), jnp.bfloat16),
        grid_spec=pltpu.PrefetchScalarGridSpec(
            num_scalar_prefetch=0,
            grid=(G, B, npb),
            in_specs=[
                pl.BlockSpec((None, None, None, c_in, lane),
                             lambda g, b, p: (g, b, p, 0, 0)),
                pl.BlockSpec((None, h1, c_in), lambda g, b, p: (g, 0, 0)),
                pl.BlockSpec((None, c_out, h1), lambda g, b, p: (g, 0, 0)),
                pl.BlockSpec((None, c_out, 1), lambda g, b, p: (g, 0, 0)),
            ],
            out_specs=pl.BlockSpec((None, c_out, tp), lambda g, b, p: (b, g, p)),
        ),
        compiler_params=pltpu.CompilerParams(
            # every block writes a distinct output tile -> fully parallel grid
            dimension_semantics=("parallel", "parallel", "parallel")),
    )(grouped, w1, w2, b2)


def ref_forward_features(grouped_list, params):
    """Pure-JAX reference (same bf16 rounding points as the kernel).

    grouped_list[i]: (B, npoint, ns_pad, c_pad) f32 (padded, pre-layout).
    """
    outs = []
    for g, (w1, w2, b2) in zip(grouped_list, params):
        x = g.astype(jnp.bfloat16).astype(jnp.float32)
        h = jnp.einsum('hc,bpsc->bpsh', w1.astype(jnp.float32), x)
        h = jnp.maximum(h, 0.0).astype(jnp.bfloat16).astype(jnp.float32)
        y = jnp.einsum('oh,bpsh->bpso', w2.astype(jnp.float32), h)
        y = jnp.max(y, axis=2)                                        # pool over nsample
        y = jnp.maximum(y + b2[:, 0][None, None, :], 0.0)
        outs.append(jnp.transpose(y, (0, 2, 1)))                      # (B, c_out, npoint)
    return jnp.concatenate(outs, axis=1)


# ----------------------------------------------------------------------------
# JAX glue: furthest point sampling, ball query, grouping (data-dependent gathers)
# TODO(synk): FPS is an inherently sequential argmax loop and ball-query is a data-
#             dependent gather; both are kept in plain JAX rather than Pallas.
# TODO(synk): fusing the grouping gather into the kernel (idx via scalar prefetch +
#             one-hot MXU gather of whole-VMEM features) would remove the grouped-tensor
#             HBM round trip (largest data-movement win, esp. v5e); left as glue for now.
# ----------------------------------------------------------------------------
def furthest_point_sample(xyz, npoint):
    """xyz: (B, N, 3) -> (B, npoint) int32. Matches pointnet2 CUDA FPS (starts at index 0)."""
    B, N, _ = xyz.shape

    def one(pts):
        def body(i, state):
            idxs, dist, farthest = state
            idxs = idxs.at[i].set(farthest)
            centroid = pts[farthest]
            d = jnp.sum((pts - centroid) ** 2, axis=-1)
            dist = jnp.minimum(dist, d)
            farthest = jnp.argmax(dist).astype(jnp.int32)
            return idxs, dist, farthest

        idxs0 = jnp.zeros((npoint,), jnp.int32)
        dist0 = jnp.full((N,), 1e10, jnp.float32)
        idxs, _, _ = jax.lax.fori_loop(0, npoint, body, (idxs0, dist0, jnp.int32(0)))
        return idxs

    return jax.vmap(one)(xyz)


def ball_query(radius, nsample, xyz, new_xyz):
    """xyz (B,N,3), new_xyz (B,npoint,3) -> idx (B,npoint,nsample) int32.

    First `nsample` in-radius indices in scan order (CUDA semantics); unfilled slots
    are replaced by the first hit.
    """
    N = xyz.shape[1]
    d2 = jnp.sum((new_xyz[:, :, None, :] - xyz[:, None, :, :]) ** 2, axis=-1)  # (B,np,N)
    within = d2 < radius ** 2
    cand = jnp.where(within, jnp.arange(N, dtype=jnp.int32), jnp.int32(N))
    neg_topk, _ = jax.lax.top_k(-cand, nsample)       # nsample smallest candidates
    cand = -neg_topk                                  # ascending = scan order
    first = cand[..., :1]
    first = jnp.where(first == N, jnp.int32(0), first)
    return jnp.where(cand == N, first, cand)


def query_and_group(radius, nsample, xyz, new_xyz, features):
    """Returns (B, npoint, nsample, 3 + C + 1) f32 with a trailing ones channel (bias lane).
    use_xyz=True semantics: relative xyz prepended to the gathered features."""
    idx = ball_query(radius, nsample, xyz, new_xyz)                                # (B,np,ns)
    grouped_xyz = jnp.take_along_axis(xyz[:, None], idx[..., None], axis=2)        # (B,np,ns,3)
    grouped_xyz = grouped_xyz - new_xyz[:, :, None, :]
    parts = [grouped_xyz]
    if features is not None:
        feat_nlast = jnp.swapaxes(features, 1, 2)                                  # (B,N,C)
        parts.append(jnp.take_along_axis(feat_nlast[:, None], idx[..., None], axis=2))
    parts.append(jnp.ones(grouped_xyz.shape[:-1] + (1,), grouped_xyz.dtype))       # bias channel
    return jnp.concatenate(parts, axis=-1)                                         # (B,np,ns,c+1)


def _pad_group(g, ns_pad, c_pad):
    """Pad nsample (repeat samples; max-pool invariant) and zero-pad channels to c_pad."""
    B, npnt, ns, c = g.shape
    if ns_pad != ns:
        rep = jnp.arange(ns_pad, dtype=jnp.int32) % ns
        g = jnp.take(g, rep, axis=2)
    if c_pad != c:
        g = jnp.pad(g, ((0, 0), (0, 0), (0, 0), (0, c_pad - c)))
    return g                                                                        # (B,np,ns_pad,c_pad)


def _layout_for_kernel(g, tp):
    """(B, np, ns, c) f32 -> (B, np//tp, c, ns*tp) bf16: point tile + samples on lanes."""
    B, npnt, ns, c = g.shape
    g = g.reshape(B, npnt // tp, tp, ns, c)
    g = jnp.transpose(g, (0, 1, 4, 3, 2))                # (B, np//tp, c, ns, tp)
    return g.reshape(B, npnt // tp, c, ns * tp).astype(jnp.bfloat16)


# ----------------------------------------------------------------------------
# The module (multi-scale-grouping variant of _PointnetSAModuleBase)
# ----------------------------------------------------------------------------
class PointnetSAModuleJAX:
    def __init__(self, npoint, radii, nsamples, mlps, key):
        assert len(radii) == len(nsamples) == len(mlps)
        assert len({m[0] for m in mlps}) == 1, "groupers must share the MLP input width"
        self.npoint = npoint
        self.radii = list(radii)
        self.nsamples = list(nsamples)
        c_in = mlps[0][0]
        self.c_pad = ((c_in + 1 + 7) // 8) * 8      # +1 ones/bias channel, round to sublanes
        self.params = []
        eps = 1e-5
        for mlp in mlps:
            c0, c1, c2 = mlp
            key, kw1, kw2, kg1, kb1, km1, kv1, kg2, kb2, km2, kv2 = jax.random.split(key, 11)
            # Conv2d(1x1, bias=False) weights, (out, in)
            w1 = 0.1 * jax.random.normal(kw1, (c1, c0), jnp.float32)
            w2 = 0.1 * jax.random.normal(kw2, (c2, c1), jnp.float32)
            # eval-mode BatchNorm params
            g1 = 1.0 + 0.1 * jax.random.normal(kg1, (c1,), jnp.float32)
            be1 = 0.1 * jax.random.normal(kb1, (c1,), jnp.float32)
            m1 = 0.1 * jax.random.normal(km1, (c1,), jnp.float32)
            v1 = jax.random.uniform(kv1, (c1,), jnp.float32, 0.5, 1.5)
            g2 = 1.0 + 0.1 * jax.random.normal(kg2, (c2,), jnp.float32)
            be2 = 0.1 * jax.random.normal(kb2, (c2,), jnp.float32)
            m2 = 0.1 * jax.random.normal(km2, (c2,), jnp.float32)
            v2 = jax.random.uniform(kv2, (c2,), jnp.float32, 0.5, 1.5)

            s1 = g1 / jnp.sqrt(v1 + eps)
            s2 = g2 / jnp.sqrt(v2 + eps)
            b1 = be1 - m1 * s1
            # Fold BN1 into w1, fold b1 into the extra ones channel, zero-pad to c_pad.
            w1f = jnp.concatenate([w1 * s1[:, None], b1[:, None]], axis=1)          # (c1, c0+1)
            w1f = jnp.pad(w1f, ((0, 0), (0, self.c_pad - (c0 + 1)))).astype(jnp.bfloat16)
            w2f = (w2 * s2[:, None]).astype(jnp.bfloat16)                           # (c2, c1)
            b2f = (be2 - m2 * s2)[:, None].astype(jnp.float32)                      # (c2, 1)
            self.params.append((w1f, w2f, b2f))
        self._uniform = (len({p[0].shape for p in self.params}) == 1 and
                         len({p[1].shape for p in self.params}) == 1)

    def __call__(self, xyz, features):
        # xyz: (B, N, 3); features: (B, C, N) or None
        fps_idx = furthest_point_sample(xyz, self.npoint)                  # (B, npoint)
        new_xyz = jnp.take_along_axis(xyz, fps_idx[..., None], axis=1)     # (B, npoint, 3)

        tp = _pick_point_tile(self.npoint)
        ns_pad = int(pl.next_power_of_2(max(self.nsamples)))               # shared pooled width

        grouped = []
        for i in range(len(self.radii)):
            g = query_and_group(self.radii[i], self.nsamples[i], xyz, new_xyz, features)
            g = _pad_group(g, ns_pad, self.c_pad)
            grouped.append(_layout_for_kernel(g, tp))                      # (B,np//tp,c,ns*tp)

        if self._uniform:
            # Single fused pallas_call over all groupers; channel concat is free.
            gstack = jnp.stack(grouped, axis=0)
            w1 = jnp.stack([p[0] for p in self.params])
            w2 = jnp.stack([p[1] for p in self.params])
            b2 = jnp.stack([p[2] for p in self.params])
            new_features = sa_mlp_maxpool(gstack, w1, w2, b2, nsample=ns_pad, tp=tp)
        else:
            outs = []
            for i, (w1, w2, b2) in enumerate(self.params):
                outs.append(sa_mlp_maxpool(grouped[i][None], w1[None], w2[None], b2[None],
                                           nsample=ns_pad, tp=tp))
            new_features = jnp.concatenate(outs, axis=1)

        return new_xyz, new_features          # (B, npoint, 3), (B, sum C_out, npoint) bf16


if __name__ == "__main__":
    key = jax.random.PRNGKey(0)
    kx, kf, kp = jax.random.split(key, 3)

    B, N, C = 2, 1024, 4
    npoint = 512                      # TP = 256 -> grid (G=2, B=2, npoint/TP=2) = 8 steps
    radii = [0.2, 0.4]
    nsamples = [8, 16]                # grouper 0 padded 8 -> 16 by repetition (max-pool safe)
    mlps = [[3 + C, 16, 32], [3 + C, 16, 32]]   # use_xyz=True -> +3 input channels

    xyz = jax.random.uniform(kx, (B, N, 3), jnp.float32)      # (B, N, 3)
    features = jax.random.normal(kf, (B, C, N), jnp.float32)  # (B, C, N)

    module = PointnetSAModuleJAX(npoint, radii, nsamples, mlps, kp)
    forward = jax.jit(module.__call__)
    new_xyz, new_features = forward(xyz, features)
    jax.block_until_ready((new_xyz, new_features))

    assert new_xyz.shape == (B, npoint, 3)
    assert new_features.shape == (B, sum(m[-1] for m in mlps), npoint)

    # One-off correctness check of the fused Pallas kernel vs pure JAX (outside the hot path).
    fps_idx = furthest_point_sample(xyz, npoint)
    nx = jnp.take_along_axis(xyz, fps_idx[..., None], axis=1)
    tp = _pick_point_tile(npoint)
    ns_pad = int(pl.next_power_of_2(max(nsamples)))
    padded, laid_out = [], []
    for r, ns in zip(radii, nsamples):
        g = _pad_group(query_and_group(r, ns, xyz, nx, features), ns_pad, module.c_pad)
        padded.append(g)
        laid_out.append(_layout_for_kernel(g, tp))
    got = sa_mlp_maxpool(jnp.stack(laid_out),
                         jnp.stack([p[0] for p in module.params]),
                         jnp.stack([p[1] for p in module.params]),
                         jnp.stack([p[2] for p in module.params]),
                         nsample=ns_pad, tp=tp).astype(jnp.float32)
    ref = ref_forward_features(padded, module.params)
    jax.block_until_ready((got, ref))
    assert jnp.allclose(got, ref, atol=1e-2, rtol=1e-2), float(jnp.max(jnp.abs(got - ref)))

    print("KERNEL_OK")
</pallas_src>

<mosaic_0001>
module attributes {stable_mosaic.version = 11 : i64} {
  func.func @_sa_mlp_maxpool_kernel(%arg0: i32, %arg1: i32, %arg2: i32, %arg3: memref<1x1x1x8x4096xbf16, #tpu.memory_space<vmem>>, %arg4: memref<1x16x8xbf16, #tpu.memory_space<vmem>>, %arg5: memref<1x32x16xbf16, #tpu.memory_space<vmem>>, %arg6: memref<1x32x1xf32, #tpu.memory_space<vmem>>, %arg7: memref<1x32x256xbf16, #tpu.memory_space<vmem>>) attributes {dimension_semantics = [#tpu.dimension_semantics<parallel>, #tpu.dimension_semantics<parallel>, #tpu.dimension_semantics<parallel>], iteration_bounds = array<i64: 2, 2, 2>, scalar_prefetch = 0 : i64, scratch_operands = 0 : i64, tpu.core_type = #tpu.core_type<tc>, window_params = [{transform_indices = @transform_0, window_bounds = array<i64: 1, 1, 1, 8, 4096>}, {transform_indices = @transform_1, window_bounds = array<i64: 1, 16, 8>}, {transform_indices = @transform_2, window_bounds = array<i64: 1, 32, 16>}, {transform_indices = @transform_3, window_bounds = array<i64: 1, 32, 1>}, {transform_indices = @transform_4, window_bounds = array<i64: 1, 32, 256>}]} {
    %c0 = arith.constant 0 : index
    %c0_0 = arith.constant 0 : index
    %c0_1 = arith.constant 0 : index
    %c0_2 = arith.constant 0 : index
    %c0_3 = arith.constant 0 : index
    %0 = vector.load %arg3[%c0, %c0_0, %c0_1, %c0_2, %c0_3] : memref<1x1x1x8x4096xbf16, #tpu.memory_space<vmem>>, vector<1x1x1x8x4096xbf16>
    %1 = vector.shape_cast %0 : vector<1x1x1x8x4096xbf16> to vector<8x4096xbf16>
    %c0_4 = arith.constant 0 : index
    %c0_5 = arith.constant 0 : index
    %c0_6 = arith.constant 0 : index
    %2 = vector.load %arg4[%c0_4, %c0_5, %c0_6] : memref<1x16x8xbf16, #tpu.memory_space<vmem>>, vector<1x16x8xbf16>
    %3 = vector.shape_cast %2 : vector<1x16x8xbf16> to vector<16x8xbf16>
    %cst = arith.constant dense<0.000000e+00> : vector<16x4096xf32>
    %4 = tpu.matmul %3, %1, %cst {dimension_numbers = #tpu.dot_dimension_numbers<[1], [0], [0], [1], [0, 0, 1, 1], [], []>} : vector<16x8xbf16>, vector<8x4096xbf16>, vector<16x4096xf32> -> vector<16x4096xf32>
    %cst_7 = arith.constant 0.000000e+00 : f32
    %5 = vector.broadcast %cst_7 : f32 to vector<16x4096xf32>
    %6 = arith.maximumf %4, %5 : vector<16x4096xf32>
    %7 = arith.truncf %6 : vector<16x4096xf32> to vector<16x4096xbf16>
    %c0_8 = arith.constant 0 : index
    %c0_9 = arith.constant 0 : index
    %c0_10 = arith.constant 0 : index
    %8 = vector.load %arg5[%c0_8, %c0_9, %c0_10] : memref<1x32x16xbf16, #tpu.memory_space<vmem>>, vector<1x32x16xbf16>
    %9 = vector.shape_cast %8 : vector<1x32x16xbf16> to vector<32x16xbf16>
    %cst_11 = arith.constant dense<0.000000e+00> : vector<32x4096xf32>
    %10 = tpu.matmul %9, %7, %cst_11 {dimension_numbers = #tpu.dot_dimension_numbers<[1], [0], [0], [1], [0, 0, 1, 1], [], []>} : vector<32x16xbf16>, vector<16x4096xbf16>, vector<32x4096xf32> -> vector<32x4096xf32>
    %11 = vector.extract_strided_slice %10 {offsets = [0, 0], sizes = [32, 2048], strides = [1, 1]} : vector<32x4096xf32> to vector<32x2048xf32>
    %12 = vector.extract_strided_slice %10 {offsets = [0, 2048], sizes = [32, 2048], strides = [1, 1]} : vector<32x4096xf32> to vector<32x2048xf32>
    %13 = arith.maximumf %11, %12 : vector<32x2048xf32>
    %14 = vector.extract_strided_slice %13 {offsets = [0, 0], sizes = [32, 1024], strides = [1, 1]} : vector<32x2048xf32> to vector<32x1024xf32>
    %15 = vector.extract_strided_slice %13 {offsets = [0, 1024], sizes = [32, 1024], strides = [1, 1]} : vector<32x2048xf32> to vector<32x1024xf32>
    %16 = arith.maximumf %14, %15 : vector<32x1024xf32>
    %17 = vector.extract_strided_slice %16 {offsets = [0, 0], sizes = [32, 512], strides = [1, 1]} : vector<32x1024xf32> to vector<32x512xf32>
    %18 = vector.extract_strided_slice %16 {offsets = [0, 512], sizes = [32, 512], strides = [1, 1]} : vector<32x1024xf32> to vector<32x512xf32>
    %19 = arith.maximumf %17, %18 : vector<32x512xf32>
    %20 = vector.extract_strided_slice %19 {offsets = [0, 0], sizes = [32, 256], strides = [1, 1]} : vector<32x512xf32> to vector<32x256xf32>
    %21 = vector.extract_strided_slice %19 {offsets = [0, 256], sizes = [32, 256], strides = [1, 1]} : vector<32x512xf32> to vector<32x256xf32>
    %22 = arith.maximumf %20, %21 : vector<32x256xf32>
    %c0_12 = arith.constant 0 : index
    %c0_13 = arith.constant 0 : index
    %c0_14 = arith.constant 0 : index
    %23 = vector.load %arg6[%c0_12, %c0_13, %c0_14] : memref<1x32x1xf32, #tpu.memory_space<vmem>>, vector<1x32x1xf32>
    %24 = vector.shape_cast %23 : vector<1x32x1xf32> to vector<32x1xf32>
    %25 = vector.broadcast %24 : vector<32x1xf32> to vector<32x256xf32>
    %26 = arith.addf %22, %25 : vector<32x256xf32>
    %cst_15 = arith.constant 0.000000e+00 : f32
    %27 = vector.broadcast %cst_15 : f32 to vector<32x256xf32>
    %28 = arith.maximumf %26, %27 : vector<32x256xf32>
    %29 = arith.truncf %28 : vector<32x256xf32> to vector<32x256xbf16>
    %c0_16 = arith.constant 0 : index
    %c0_17 = arith.constant 0 : index
    %c0_18 = arith.constant 0 : index
    %30 = vector.load %arg7[%c0_16, %c0_17, %c0_18] : memref<1x32x256xbf16, #tpu.memory_space<vmem>>, vector<1x32x256xbf16>
    %31 = vector.shape_cast %30 : vector<1x32x256xbf16> to vector<32x256xbf16>
    %32 = vector.shape_cast %29 : vector<32x256xbf16> to vector<1x32x256xbf16>
    tpu.vector_store %arg7[%c0_16, %c0_17, %c0_18], %32 {strides = array<i32>} : memref<1x32x256xbf16, #tpu.memory_space<vmem>>, vector<1x32x256xbf16>,
    return
  }
  func.func @transform_0(%arg0: i32, %arg1: i32, %arg2: i32) -> (i32, i32, i32, i32, i32) {
    %c0_i32 = arith.constant 0 : i32
    %c0_i32_0 = arith.constant 0 : i32
    %c0_i32_1 = arith.constant 0 : i32
    return %arg0, %arg1, %arg2, %c0_i32, %c0_i32_0 : i32, i32, i32, i32, i32
  }
  func.func @transform_1(%arg0: i32, %arg1: i32, %arg2: i32) -> (i32, i32, i32) {
    %c0_i32 = arith.constant 0 : i32
    %c0_i32_0 = arith.constant 0 : i32
    %c0_i32_1 = arith.constant 0 : i32
    return %arg0, %c0_i32, %c0_i32_0 : i32, i32, i32
  }
  func.func @transform_2(%arg0: i32, %arg1: i32, %arg2: i32) -> (i32, i32, i32) {
    %c0_i32 = arith.constant 0 : i32
    %c0_i32_0 = arith.constant 0 : i32
    %c0_i32_1 = arith.constant 0 : i32
    return %arg0, %c0_i32, %c0_i32_0 : i32, i32, i32
  }
  func.func @transform_3(%arg0: i32, %arg1: i32, %arg2: i32) -> (i32, i32, i32) {
    %c0_i32 = arith.constant 0 : i32
    %c0_i32_0 = arith.constant 0 : i32
    %c0_i32_1 = arith.constant 0 : i32
    return %arg0, %c0_i32, %c0_i32_0 : i32, i32, i32
  }
  func.func @transform_4(%arg0: i32, %arg1: i32, %arg2: i32) -> (i32, i32, i32) {
    %c0_i32 = arith.constant 0 : i32
    return %arg1, %arg0, %arg2 : i32, i32, i32
  }
}

</mosaic_0001>

<bundles_post_ra>
// kernel: custom-call.12
= control target key start
LH: loop header
LB: loop body
LE: loop exit
PB: predicated region body
PF: predicated region fallthrough
CT: control target
= control target key end

     0   :  { %s6_s0 = inlined_call_operand.vmem [shape: f32[2,1024], index: 0, kind: output, shape index: {}]  }

// kernel: a_call__.1
= control target key start
LH: loop header
LB: loop body
LE: loop exit
PB: predicated region body
PF: predicated region fallthrough
CT: control target
= control target key end

     0   :  { %9 = vsyncpa [#allocation3], 0  ;;  %s3560_s0 = inlined_call_operand.vmem [shape: bf16[2,2,2,8,4096], index: 0, kind: input, shape index: {}]   ;;  %s3561_s1 = inlined_call_operand.vmem [shape: bf16[2,16,8], index: 1, kind: input, shape index: {}]   ;;  %s3562_s2 = inlined_call_operand.vmem [shape: bf16[2,32,16], index: 2, kind: input, shape index: {}]   ;;  %s3563_s3 = inlined_call_operand.vmem [shape: f32[2,32,1], index: 3, kind: input, shape index: {}]   ;;  %s3564_s4 = inlined_call_operand.hbm [shape: bf16[2,64,512], index: 4, kind: output, shape index: {}]  }
   0x1   :  { %11 = vsyncpa [#allocation3 + $0x1], 0  ;;  %s2912_s15 = smov 0   ;;  %s2914_s16 = smov 0  }
   0x2   :  { %s2916_s17 = smov 0   ;;  %s2918_s18 = smov 0  }
   0x3   :  { %s2920_s19 = smov 0   ;;  %s2922_s20 = smov 0  }
   0x4   :  { %s2924_s21 = smov 0   ;;  %s2926_s22 = smov 0  }
   0x5   :  { %s2928_s23 = smov 0   ;;  %s2930_s24 = smov 0  }
   0x6 LB: > { %3573 = sst [smem:[#allocation5_spill]] %s2852_s17  ;;  %s2509_s25 = sadd.s32 4294967295, %s2880_s24   ;;  %s2880_s24 = sphi %s2930_s24, %s17_s24   ;;  %s2876_s23 = sphi %s2928_s23, %s3628_s23   ;;  %s2872_s22 = sphi %s2926_s22, %s3627_s22   ;;  %s2868_s21 = sphi %s2924_s21, %s3626_s21   ;;  %s2864_s20 = sphi %s2922_s20, %s3625_s20   ;;  %s2860_s19 = sphi %s2920_s19, %s3631_s19   ;;  %s2856_s18 = sphi %s2918_s18, %s3623_s18   ;;  %s2852_s17 = sphi %s2916_s17, %s3622_s17   ;;  %s2848_s16 = sphi %s2914_s16, %s3630_s16   ;;  %s2844_s15 = sphi %s2912_s15, %s3629_s15  }
   0x7   : > { %3574 = sst [smem:[#allocation6_spill]] %s2868_s21  ;;  %s29_s26 = sadd.s32 1, %s2868_s21 }
   0x8   : > { %3575 = sst [smem:[#allocation7_spill]] %s2872_s22  ;;  %p30_p0 = scmp.ge.s32.totalorder %s29_s26, 2 }
   0x9   : > { %3576 = sst [smem:[#allocation8_spill]] %s2876_s23  ;;  %s32_s27 = sadd.s32 1, %s2872_s22 }
   0xa   : > { %s2510_s28 = sadd.s32 4294967294, %s2880_s24   ;;  %p165_p1 = scmp.ne.s32.totalorder %s2852_s17, %s2848_s16 }
   0xb   : > { %s3633_s26 = smov (%p30_p0, %s29_s26), 0  ;;  %s3635_s27 = smov (!%p30_p0, %s32_s27), %s2872_s22 }
   0xc   : > { %3577 = sst [smem:[#allocation9_spill]] %s3633_s26  ;;  %s36_s29 = sadd.s32 1, %s2876_s23 }
   0xd   : > { %p166_p2 = scmp.eq.s32.totalorder %s2509_s25, 7  ;;  %p34_p3 = scmp.ge.s32.totalorder %s3635_s27, 2 }
   0xe   : > { %p171_p4 = scmp.ne.s32.totalorder %s2848_s16, %s2844_s15  ;;  %p172_p6 = scmp.eq.s32.totalorder %s2510_s28, 7 }
   0xf   : > { %p2974_p5 = por %p166_p2, %p165_p1  ;;  %s3637_s27 = smov (%p34_p3, %s3635_s27), 0 }
  0x10   : > { %3579 = sst [smem:[#allocation10_spill]] %s3637_s27  ;;  %s3639_s29 = smov (!%p34_p3, %s36_s29), %s2876_s23 }
  0x11   : > { %p2981_p7 = por %p172_p6, %p171_p4  ;;  %p38_p8 = scmp.ge.s32.totalorder %s3639_s29, 2 }
  0x12   : > { %p2513_p9 = scmp.ge.s32.totalorder %s2880_s24, 1  ;;  %s148_s6 = ssub.s32 %s2872_s22, %s3637_s27 }
  0x13   : > { %s3580_s5 = scalar_select %p2981_p7, 1, 0 }
  0x14   : > { %p230_p10 = scmp.lt.s32.totalorder %s2880_s24, 9  ;;  %s3641_s29 = smov (%p38_p8, %s3639_s29), 0 }
  0x15   : > { %3581 = sst [smem:[#allocation11_spill]] %s3580_s5  ;;  %s151_s7 = ssub.s32 %s2868_s21, %s3633_s26 }
  0x16   : > { %3582 = sst [smem:[#allocation12_spill]] %s3641_s29  ;;  %p231_p11 = pnand %p2513_p9, %p230_p10 }
  0x17   : > { %s149_s8 = ssub.s32 %s2876_s23, %s3641_s29  ;;  %s155_s11 = sadd.s32 1, %s2852_s17 }
  0x18   : > { %s150_s9 = sor.u32 %s149_s8, %s148_s6 }
  0x19   : > { %s152_s10 = sor.u32 %s151_s7, %s150_s9 }
  0x1a   : > { %p153_p12 = scmp.eq.s32.totalorder %s152_s10, 0  ;;  %234 = sbr.rel (%p231_p11) target bundleno = 600 (0x258), region = 36 }
  0x1c   : > { %s2997_s12 = scalar_select %p153_p12, %s2852_s17, %s155_s11  }
  0x1e   : > { %3583 = sst [smem:[#allocation13_spill]] %s2997_s12 }
  0x1f   : > { %p279_p13 = scmp.lt.s32.totalorder %s2864_s20, 1  ;;  %p281_p0 = scmp.lt.s32.totalorder %s2860_s19, 1  ;;  %v2882_v0 = vmov 0   ;;  %vm417_vm0 = vcmask 1043456   ;;  %vm413_vm1 = vcmask 64512   ;;  %vm1312_vm2 = vcmask 130048  }
  0x20   : > { %p283_p1 = scmp.lt.s32.totalorder %s2856_s18, 1  ;;  %546 = vmatprep.mubr.bf16.mxu0 %v2882_v0  ;;  %589 = vmatprep.mubr.bf16.mxu1 %v2882_v0  ;;  %s2643_s5 = sshll.u32 %s2864_s20, 4 }
  0x21   : > { %s3005_s13 = scalar_select %p279_p13, %s2864_s20, 1  ;;  %2735 = vset.pattern.permute.xlu0 %v2882_v0  ;;  %2736 = vset.pattern.permute.xlu1 %v2882_v0 }
  0x22   : > { %s282_s14 = scalar_select %p281_p0, %s2860_s19, 1 }
  0x23   : > { %s284_s25 = scalar_select %p283_p1, %s2856_s18, 1 }
  0x24   : > { %s2516_s28 = sshll.u32 %s282_s14, 6  ;;  %s2517_s6 = sshll.u32 %s3005_s13, 7 }
  0x25   : > { %s2515_s7 = sshll.u32 %s284_s25, 5  ;;  %s2636_s8 = sshll.u32 %s3005_s13, 3 }
  0x26   : > { %s287_s9 = sadd.s32 %s2516_s28, %s2515_s7  ;;  %s296_s29 = scalar_lea.vmem %s3561_s1, %s2636_s8 }
  0x27   : > { %s289_s27 = sadd.s32 %s2517_s6, %s287_s9  ;;  %s2637_s26 = sshll.u32 %s3005_s13, 4  ;;  %v3031_v11 = vld [vmem:[%s296_s29] sm:$0xff]  }
  0x28   : > { %s2518_s23 = sshll.u32 %s289_s27, 2  ;;  %s3020_s12 = scalar_lea.vmem %s3562_s2, %s2637_s26 }
  0x29   : > { %s3025_s14 = scalar_lea.vmem %s3560_s0, %s2518_s23  ;;  %s2638_s17 = sshll.u32 %s3005_s13, 5 }
  0x2a   : > { %v310_v1 = vld [vmem:[%s3025_s14] sm:$0xff]  ;;  %v311_v3 = vld [vmem:[%s3025_s14 + $0x8] sm:$0xff]  ;;  %v312_v5 = vld [vmem:[%s3025_s14 + $0x10] sm:$0xff]  ;;  %s3129_s23 = scalar_lea.vmem %s3563_s3, %s2638_s17  ;;  %s276_s26 = sand.u32 1, %s2848_s16  }
  0x2b   : > { %v2527_v2 = vcombine.high %v310_v1, %v310_v1  ;;  %v2526_v4 = vcombine.low %v310_v1, %v310_v1  ;;  %v2529_v6 = vcombine.high %v311_v3, %v311_v3  ;;  %v2528_v7 = vcombine.low %v311_v3, %v311_v3  ;;  %v313_v9 = vld [vmem:[%s3025_s14 + $0x18] sm:$0xff]  ;;  %v314_v15 = vld [vmem:[%s3025_s14 + $0x20] sm:$0xff]  ;;  %v315_v17 = vld [vmem:[%s3025_s14 + $0x28] sm:$0xff]  ;;  %s2514_s27 = sshll.u32 %s276_s26, 5  ;;  %s2630_s29 = sshll.u32 %s2856_s18, 1 }
  0x2c   : > { %v2531_v8 = vcombine.high %v312_v5, %v312_v5  ;;  %v2530_v10 = vcombine.low %v312_v5, %v312_v5  ;;  %v2533_v13 = vcombine.high %v313_v9, %v313_v9  ;;  %v2532_v14 = vcombine.low %v313_v9, %v313_v9  ;;  %v316_v24 = vld [vmem:[%s3025_s14 + $0x30] sm:$0xff]  ;;  %v317_v25 = vld [vmem:[%s3025_s14 + $0x38] sm:$0xff]  ;;  %v318_v32 = vld [vmem:[%s3025_s14 + $0x40] sm:$0xff]  ;;  %s2369_s18 = sadd.s32 %s2643_s5, %s2630_s29  ;;  %s2632_s20 = sshll.u32 %s2860_s19, 5 }
  0x2d   : > { %2558 = vmatprep.subr.msk.bf16.mxu0 %vm417_vm0, %v2527_v2  ;;  %v419_v12 = vsel %vm417_vm0, %v2526_v4, 0  ;;  %2560 = vmatprep.subr.msk.bf16.mxu1 %vm417_vm0, %v2529_v6  ;;  %v425_v16 = vsel %vm417_vm0, %v2528_v7, 0  ;;  %v2535_v20 = vcombine.high %v314_v15, %v314_v15  ;;  %v2537_v21 = vcombine.high %v315_v17, %v315_v17  ;;  %v319_v33 = vld [vmem:[%s3025_s14 + $0x48] sm:$0xff]  ;;  %v320_v40 = vld [vmem:[%s3025_s14 + $0x50] sm:$0xff]  ;;  %v321_v41 = vld [vmem:[%s3025_s14 + $0x58] sm:$0xff]  ;;  %s2371_s13 = sadd.s32 %s2632_s20, %s2369_s18  ;;  %s3503_s8 = scalar_lea.sflag [#allocation3], %s276_s26 }
  0x2e   : > { %529 = vmatpush1.bf16.msra.mxu0 %v419_v12  ;;  %572 = vmatpush1.bf16.msra.mxu1 %v425_v16  ;;  %v431_v18 = vsel %vm417_vm0, %v2530_v10, 0  ;;  %v437_v19 = vsel %vm417_vm0, %v2532_v14, 0  ;;  %v2534_v22 = vcombine.low %v314_v15, %v314_v15  ;;  %v2536_v23 = vcombine.low %v315_v17, %v315_v17  ;;  %v322_v48 = vld [vmem:[%s3025_s14 + $0x60] sm:$0xff]  ;;  %v323_v49 = vld [vmem:[%s3025_s14 + $0x68] sm:$0xff]  ;;  %v324_v56 = vld [vmem:[%s3025_s14 + $0x70] sm:$0xff]  ;;  %s2633_s19 = sshll.u32 %s2371_s13, 6 }
  0x2f   : > { %2562 = vmatprep.subr.msk.bf16.mxu0 %vm417_vm0, %v2531_v8  ;;  %2564 = vmatprep.subr.msk.bf16.mxu1 %vm417_vm0, %v2533_v13  ;;  %v2539_v28 = vcombine.high %v316_v24, %v316_v24  ;;  %v2541_v29 = vcombine.high %v317_v25, %v317_v25  ;;  %v2538_v30 = vcombine.low %v316_v24, %v316_v24  ;;  %v325_v57 = vld [vmem:[%s3025_s14 + $0x78] sm:$0xff]  ;;  %s3498_s7 = scalar_lea.hbm %s3564_s4, %s2633_s19  ;;  %s2883_s10 = smov [#allocation2]  }
  0x30   : > { %v443_v26 = vsel %vm417_vm0, %v2534_v22, 0  ;;  %v449_v27 = vsel %vm417_vm0, %v2536_v23, 0  ;;  %v2540_v31 = vcombine.low %v317_v25, %v317_v25  ;;  %v2543_v36 = vcombine.high %v318_v32, %v318_v32  ;;  %v2287_v25 = vld [vmem:[%s3129_s23] sm:$0xff]  ;;  %s2776_s11 = sshll.u32 %s2883_s10, 4  ;;  %s2777_s11 = int_to_ptr.vmem [resolvable:$false] %s2776_s11 }
  0x31   : > { %2559 = vmatmul.mubr.msk.bf16.vlgmr.msra.gmra.mxu0 %vm413_vm1, %v3031_v11  ;;  %2561 = vmatmul.mubr.msk.bf16.vlgmr.msra.gmra.mxu1 %vm413_vm1, %v3031_v11  ;;  %v455_v34 = vsel %vm417_vm0, %v2538_v30, 0  ;;  %v2545_v37 = vcombine.high %v319_v33, %v319_v33  ;;  %v2542_v38 = vcombine.low %v318_v32, %v318_v32  ;;  %v2544_v39 = vcombine.low %v319_v33, %v319_v33  ;;  %s2778_s14 = scalar_lea.vmem %s2777_s11, 1024 }
  0x32   : > { %615 = vmatpush1.bf16.msra.mxu0 %v431_v18  ;;  %658 = vmatpush1.bf16.msra.mxu1 %v437_v19  ;;  %v461_v35 = vsel %vm417_vm0, %v2540_v31, 0  ;;  %v2547_v44 = vcombine.high %v320_v40, %v320_v40  ;;  %v2549_v45 = vcombine.high %v321_v41, %v321_v41  ;;  %v2546_v46 = vcombine.low %v320_v40, %v320_v40 }
  0x33   : > { %632 = vmatprep.mubr.bf16.mxu0 %v2882_v0  ;;  %675 = vmatprep.mubr.bf16.mxu1 %v2882_v0  ;;  %v467_v42 = vsel %vm417_vm0, %v2542_v38, 0  ;;  %v473_v43 = vsel %vm417_vm0, %v2544_v39, 0  ;;  %v2548_v47 = vcombine.low %v321_v41, %v321_v41  ;;  %v2551_v52 = vcombine.high %v322_v48, %v322_v48 }
  0x34   : > { %2566 = vmatprep.subr.msk.bf16.mxu0 %vm417_vm0, %v2535_v20  ;;  %2568 = vmatprep.subr.msk.bf16.mxu1 %vm417_vm0, %v2537_v21  ;;  %v479_v50 = vsel %vm417_vm0, %v2546_v46, 0  ;;  %v2553_v53 = vcombine.high %v323_v49, %v323_v49  ;;  %v2550_v54 = vcombine.low %v322_v48, %v322_v48  ;;  %v2552_v55 = vcombine.low %v323_v49, %v323_v49  ;;  %v3142_v48 = vld [vmem:[%s3020_s12 + $0x8] sm:$0xff]  }
  0x35   : > { %v485_v51 = vsel %vm417_vm0, %v2548_v47, 0  ;;  %v2555_v60 = vcombine.high %v324_v56, %v324_v56  ;;  %v2557_v61 = vcombine.high %v325_v57, %v325_v57  ;;  %v2554_v62 = vcombine.low %v324_v56, %v324_v56  ;;  %2293 = vperm.xlu0 %2735, %v2287_v25  }
  0x36   : > { %v491_v58 = vsel %vm417_vm0, %v2550_v54, 0  ;;  %v497_v59 = vsel %vm417_vm0, %v2552_v55, 0  ;;  %v2556_v63 = vcombine.low %v325_v57, %v325_v57 }
  0x37   : > { %v503_v1 = vsel %vm417_vm0, %v2554_v62, 0 }
  0x38   : > { %v509_v2 = vsel %vm417_vm0, %v2556_v63, 0 }
  0x39   : > { %2563 = vmatmul.mubr.msk.bf16.vlgmr.msra.gmra.mxu0 %vm413_vm1, %v3031_v11  ;;  %2565 = vmatmul.mubr.msk.bf16.vlgmr.msra.gmra.mxu1 %vm413_vm1, %v3031_v11 }
  0x3a   : > { %701 = vmatpush1.bf16.msra.mxu0 %v443_v26  ;;  %744 = vmatpush1.bf16.msra.mxu1 %v449_v27  ;;  %v3133_v26 = vld [vmem:[%s3020_s12] sm:$0xff]   ;;  %s3486_s12 = scalar_lea.vmem [#allocation2], %s2514_s27 }
  0x3b   : > { %718 = vmatprep.mubr.bf16.mxu0 %v2882_v0  ;;  %761 = vmatprep.mubr.bf16.mxu1 %v2882_v0  ;;  %s2374_s25 = sshll.u32 %s3486_s12, 4  ;;  %s3492_s25 = int_to_ptr.vmem [resolvable:$true] %s2374_s25 }
  0x3c   : > { %2570 = vmatprep.subr.msk.bf16.mxu0 %vm417_vm0, %v2539_v28  ;;  %2572 = vmatprep.subr.msk.bf16.mxu1 %vm417_vm0, %v2541_v29  ;;  %s2772_s9 = scalar_lea.vmem %s3492_s25, 512  ;;  %p2779_p6 = scmp.lt.s32.totalorder %s3492_s25, %s2777_s11 }
  0x3d   : > { %p2773_p2 = scmp.ne.s32.totalorder %s3492_s25, %s2772_s9  ;;  %p2780_p8 = scmp.lt.s32.totalorder %s2778_s14, %s2772_s9 }
  0x3f   : > { %p2774_p3 = pnand %p2773_p2, %p2974_p5  ;;  %p2781_p9 = por %p2780_p8, %p2779_p6 }
  0x41   : > { %2567 = vmatmul.mubr.msk.bf16.vlgmr.msra.gmra.mxu0 %vm413_vm1, %v3031_v11  ;;  %2569 = vmatmul.mubr.msk.bf16.vlgmr.msra.gmra.mxu1 %vm413_vm1, %v3031_v11  ;;  %p2775_p4 = pneg %p2774_p3 }
  0x42   : > { %787 = vmatpush1.bf16.msra.mxu0 %v455_v34  ;;  %830 = vmatpush1.bf16.msra.mxu1 %v461_v35 }
  0x43   : > { %804 = vmatprep.mubr.bf16.mxu0 %v2882_v0  ;;  %847 = vmatprep.mubr.bf16.mxu1 %v2882_v0  ;;  %p2782_p10 = pnand %p2781_p9, %p2775_p4 }
  0x44   : > { %2574 = vmatprep.subr.msk.bf16.mxu0 %vm417_vm0, %v2543_v36  ;;  %2576 = vmatprep.subr.msk.bf16.mxu1 %vm417_vm0, %v2545_v37 }
  0x49   : > { %2571 = vmatmul.mubr.msk.bf16.vlgmr.msra.gmra.mxu0 %vm413_vm1, %v3031_v11  ;;  %2573 = vmatmul.mubr.msk.bf16.vlgmr.msra.gmra.mxu1 %vm413_vm1, %v3031_v11 }
  0x4a   : > { %873 = vmatpush1.bf16.msra.mxu0 %v467_v42  ;;  %916 = vmatpush1.bf16.msra.mxu1 %v473_v43 }
  0x4b   : > { %890 = vmatprep.mubr.bf16.mxu0 %v2882_v0  ;;  %933 = vmatprep.mubr.bf16.mxu1 %v2882_v0 }
  0x4c   : > { %2578 = vmatprep.subr.msk.bf16.mxu0 %vm417_vm0, %v2547_v44  ;;  %2580 = vmatprep.subr.msk.bf16.mxu1 %vm417_vm0, %v2549_v45 }
  0x51   : > { %2575 = vmatmul.mubr.msk.bf16.vlgmr.msra.gmra.mxu0 %vm413_vm1, %v3031_v11  ;;  %2577 = vmatmul.mubr.msk.bf16.vlgmr.msra.gmra.mxu1 %vm413_vm1, %v3031_v11 }
  0x52   : > { %959 = vmatpush1.bf16.msra.mxu0 %v479_v50  ;;  %1002 = vmatpush1.bf16.msra.mxu1 %v485_v51 }
  0x53   : > { %976 = vmatprep.mubr.bf16.mxu0 %v2882_v0  ;;  %1019 = vmatprep.mubr.bf16.mxu1 %v2882_v0 }
  0x54   : > { %2582 = vmatprep.subr.msk.bf16.mxu0 %vm417_vm0, %v2551_v52  ;;  %2584 = vmatprep.subr.msk.bf16.mxu1 %vm417_vm0, %v2553_v53 }
  0x59   : > { %2579 = vmatmul.mubr.msk.bf16.vlgmr.msra.gmra.mxu0 %vm413_vm1, %v3031_v11  ;;  %2581 = vmatmul.mubr.msk.bf16.vlgmr.msra.gmra.mxu1 %vm413_vm1, %v3031_v11 }
  0x5a   : > { %1045 = vmatpush1.bf16.msra.mxu0 %v491_v58  ;;  %1088 = vmatpush1.bf16.msra.mxu1 %v497_v59 }
  0x5b   : > { %1062 = vmatprep.mubr.bf16.mxu0 %v2882_v0  ;;  %1105 = vmatprep.mubr.bf16.mxu1 %v2882_v0 }
  0x5c   : > { %2586 = vmatprep.subr.msk.bf16.mxu0 %vm417_vm0, %v2555_v60  ;;  %2588 = vmatprep.subr.msk.bf16.mxu1 %vm417_vm0, %v2557_v61 }
  0x61   : > { %2583 = vmatmul.mubr.msk.bf16.vlgmr.msra.gmra.mxu0 %vm413_vm1, %v3031_v11  ;;  %2585 = vmatmul.mubr.msk.bf16.vlgmr.msra.gmra.mxu1 %vm413_vm1, %v3031_v11 }
  0x62   : > { %1131 = vmatpush1.bf16.msra.mxu0 %v503_v1  ;;  %1174 = vmatpush1.bf16.msra.mxu1 %v509_v2 }
  0x63   : > { %1148 = vmatprep.mubr.bf16.mxu0 %v2882_v0  ;;  %1191 = vmatprep.mubr.bf16.mxu1 %v2882_v0 }
  0x69   : > { %2587 = vmatmul.mubr.msk.bf16.vlgmr.msra.gmra.mxu0 %vm413_vm1, %v3031_v11  ;;  %2589 = vmatmul.mubr.msk.bf16.vlgmr.msra.gmra.mxu1 %vm413_vm1, %v3031_v11 }
  0x6a   : > { %1351 = vmatprep.mubr.bf16.mxu0 %v2882_v0  ;;  %1404 = vmatprep.mubr.bf16.mxu1 %v2882_v0 }
  0xf1   : > { %v548_v3 = vpop.f32.mrf.mxu0  ;;  %v591_v4 = vpop.f32.mrf.mxu1 }
  0xf2   : > { %v1202_v16 = vmax.f32 %v548_v3, 0.0  ;;  %v1204_v19 = vmax.f32 %v591_v4, 0.0 }
  0xf3   : > { %v550_v5 = vpop.f32.mrf.mxu0  ;;  %v593_v6 = vpop.f32.mrf.mxu1 }
  0xf4   : > { %v1203_v12 = vmax.f32 %v550_v5, 0.0  ;;  %v1205_v11 = vmax.f32 %v593_v6, 0.0 }
  0xf5   : > { %v552_v7 = vpop.f32.mrf.mxu0  ;;  %v595_v8 = vpop.f32.mrf.mxu1 }
  0xf6   : > { %v1234_v9 = vmax.f32 %v552_v7, 0.0  ;;  %v1236_v13 = vmax.f32 %v595_v8, 0.0 }
  0xf7   : > { %v554_v10 = vpop.f32.mrf.mxu0  ;;  %v597_v15 = vpop.f32.mrf.mxu1 }
  0xf8   : > { %v1235_v14 = vmax.f32 %v554_v10, 0.0  ;;  %v1237_v17 = vmax.f32 %v597_v15, 0.0  ;;  %v1266_v22 = vpack.c.bf16 %v1234_v9, %v1202_v16  ;;  %v1268_v27 = vpack.c.bf16 %v1236_v13, %v1204_v19 }
  0xf9   : > { %v634_v18 = vpop.f32.mrf.mxu0  ;;  %v677_v21 = vpop.f32.mrf.mxu1 }
  0xfa   : > { %v1267_v20 = vpack.c.bf16 %v1235_v14, %v1203_v12  ;;  %v1269_v23 = vpack.c.bf16 %v1237_v17, %v1205_v11  ;;  %v1206_v29 = vmax.f32 %v634_v18, 0.0  ;;  %v1208_v31 = vmax.f32 %v677_v21, 0.0 }
  0xfb   : > { %v636_v24 = vpop.f32.mrf.mxu0  ;;  %v679_v28 = vpop.f32.mrf.mxu1 }
  0xfc   : > { %1333 = vmatprep.subr.bf16.mxu0 %v1267_v20  ;;  %1386 = vmatprep.subr.bf16.mxu1 %v1269_v23  ;;  %v1207_v32 = vmax.f32 %v636_v24, 0.0  ;;  %v1209_v35 = vmax.f32 %v679_v28, 0.0 }
  0xfd   : > { %v638_v30 = vpop.f32.mrf.mxu0  ;;  %1334 = vmatpush1.bf16.msra.mxu0 %v1266_v22  ;;  %v681_v34 = vpop.f32.mrf.mxu1  ;;  %1387 = vmatpush1.bf16.msra.mxu1 %v1268_v27 }
  0xfe   : > { %v1238_v33 = vmax.f32 %v638_v30, 0.0  ;;  %v1240_v36 = vmax.f32 %v681_v34, 0.0 }
  0xff   : > { %v640_v37 = vpop.f32.mrf.mxu0  ;;  %v683_v39 = vpop.f32.mrf.mxu1 }
 0x100   : > { %v1239_v38 = vmax.f32 %v640_v37, 0.0  ;;  %2592 = vmatmul.mubr.msk.bf16.vlgmr.msra.gmra.mxu0 %vm1312_vm2, %v3133_v26  ;;  %v1270_v40 = vpack.c.bf16 %v1238_v33, %v1206_v29  ;;  %v1241_v41 = vmax.f32 %v683_v39, 0.0  ;;  %2594 = vmatmul.mubr.msk.bf16.vlgmr.msra.gmra.mxu1 %vm1312_vm2, %v3133_v26  ;;  %v1272_v43 = vpack.c.bf16 %v1240_v36, %v1208_v31 }
 0x101   : > { %v720_v42 = vpop.f32.mrf.mxu0  ;;  %1361 = vmatprep.mubr.bf16.mxu0 %v2882_v0  ;;  %v763_v45 = vpop.f32.mrf.mxu1  ;;  %1414 = vmatprep.mubr.bf16.mxu1 %v2882_v0 }
 0x102   : > { %v1271_v44 = vpack.c.bf16 %v1239_v38, %v1207_v32  ;;  %v1273_v46 = vpack.c.bf16 %v1241_v41, %v1209_v35  ;;  %v1210_v57 = vmax.f32 %v720_v42, 0.0  ;;  %v1212_v61 = vmax.f32 %v763_v45, 0.0 }
 0x103   : > { %v722_v47 = vpop.f32.mrf.mxu0  ;;  %v765_v49 = vpop.f32.mrf.mxu1 }
 0x104   : > { %1439 = vmatprep.subr.bf16.mxu0 %v1271_v44  ;;  %1492 = vmatprep.subr.bf16.mxu1 %v1273_v46  ;;  %v1211_v51 = vmax.f32 %v722_v47, 0.0  ;;  %v1213_v53 = vmax.f32 %v765_v49, 0.0 }
 0x105   : > { %1440 = vmatpush1.bf16.msra.mxu0 %v1270_v40  ;;  %v724_v50 = vpop.f32.mrf.mxu0  ;;  %1493 = vmatpush1.bf16.msra.mxu1 %v1272_v43  ;;  %v767_v52 = vpop.f32.mrf.mxu1 }
 0x106   : > { %v1242_v58 = vmax.f32 %v724_v50, 0.0  ;;  %v1244_v62 = vmax.f32 %v767_v52, 0.0 }
 0x107   : > { %v726_v54 = vpop.f32.mrf.mxu0  ;;  %v769_v56 = vpop.f32.mrf.mxu1 }
 0x108   : > { %2593 = vmatmul.mubr.msk.bf16.gmra.mxu0 %vm1312_vm2, %v3142_v48  ;;  %v1243_v55 = vmax.f32 %v726_v54, 0.0  ;;  %2595 = vmatmul.mubr.msk.bf16.gmra.mxu1 %vm1312_vm2, %v3142_v48  ;;  %v1245_v59 = vmax.f32 %v769_v56, 0.0  ;;  %v1274_v5 = vpack.c.bf16 %v1242_v58, %v1210_v57  ;;  %v1276_v7 = vpack.c.bf16 %v1244_v62, %v1212_v61 }
 0x109   : > { %1457 = vmatprep.mubr.bf16.mxu0 %v2882_v0  ;;  %v806_v60 = vpop.f32.mrf.mxu0  ;;  %1510 = vmatprep.mubr.bf16.mxu1 %v2882_v0  ;;  %v849_v1 = vpop.f32.mrf.mxu1 }
 0x10a   : > { %v1275_v63 = vpack.c.bf16 %v1243_v55, %v1211_v51  ;;  %v1277_v2 = vpack.c.bf16 %v1245_v59, %v1213_v53  ;;  %v1214_v24 = vmax.f32 %v806_v60, 0.0  ;;  %v1216_v28 = vmax.f32 %v849_v1, 0.0 }
 0x10b   : > { %v808_v3 = vpop.f32.mrf.mxu0  ;;  %v851_v4 = vpop.f32.mrf.mxu1 }
 0x10c   : > { %1545 = vmatprep.subr.bf16.mxu0 %v1275_v63  ;;  %1598 = vmatprep.subr.bf16.mxu1 %v1277_v2  ;;  %v1215_v8 = vmax.f32 %v808_v3, 0.0  ;;  %v1217_v10 = vmax.f32 %v851_v4, 0.0 }
 0x10d   : > { %v810_v6 = vpop.f32.mrf.mxu0  ;;  %v853_v9 = vpop.f32.mrf.mxu1 }
 0x10e   : > { %v1246_v25 = vmax.f32 %v810_v6, 0.0  ;;  %v1248_v29 = vmax.f32 %v853_v9, 0.0 }
 0x10f   : > { %v812_v12 = vpop.f32.mrf.mxu0  ;;  %v855_v14 = vpop.f32.mrf.mxu1 }
 0x110   : > { %2596 = vmatmul.mubr.msk.bf16.vlgmr.msra.gmra.mxu0 %vm1312_vm2, %v3133_v26  ;;  %v1247_v13 = vmax.f32 %v812_v12, 0.0  ;;  %2598 = vmatmul.mubr.msk.bf16.vlgmr.msra.gmra.mxu1 %vm1312_vm2, %v3133_v26  ;;  %v1249_v15 = vmax.f32 %v855_v14, 0.0  ;;  %v1278_v35 = vpack.c.bf16 %v1246_v25, %v1214_v24  ;;  %v1280_v37 = vpack.c.bf16 %v1248_v29, %v1216_v28 }
 0x111   : > { %1546 = vmatpush1.bf16.msra.mxu0 %v1274_v5  ;;  %v892_v16 = vpop.f32.mrf.mxu0  ;;  %1599 = vmatpush1.bf16.msra.mxu1 %v1276_v7  ;;  %v935_v17 = vpop.f32.mrf.mxu1 }
 0x112   : > { %1467 = vmatprep.mubr.bf16.mxu0 %v2882_v0  ;;  %v1279_v11 = vpack.c.bf16 %v1247_v13, %v1215_v8  ;;  %1520 = vmatprep.mubr.bf16.mxu1 %v2882_v0  ;;  %v1281_v18 = vpack.c.bf16 %v1249_v15, %v1217_v10  ;;  %v1218_v45 = vmax.f32 %v892_v16, 0.0  ;;  %v1220_v49 = vmax.f32 %v935_v17, 0.0  ;;  %v2288_v16 = vld [vmem:[%s3129_s23 + $0x8] sm:$0xff] }
 0x113   : > { %v894_v19 = vpop.f32.mrf.mxu0  ;;  %v937_v20 = vpop.f32.mrf.mxu1  ;;  %2298 = vperm.xlu0 %2735, %v2288_v16  }
 0x114   : > { %1651 = vmatprep.subr.bf16.mxu0 %v1279_v11  ;;  %1704 = vmatprep.subr.bf16.mxu1 %v1281_v18  ;;  %v1219_v30 = vmax.f32 %v894_v19, 0.0  ;;  %v1221_v32 = vmax.f32 %v937_v20, 0.0  ;;  %v2289_v18 = vld [vmem:[%s3129_s23 + $0x10] sm:$0xff] }
 0x115   : > { %v896_v21 = vpop.f32.mrf.mxu0  ;;  %v939_v22 = vpop.f32.mrf.mxu1  ;;  %2303 = vperm.xlu1 %2736, %v2289_v18  }
 0x116   : > { %v1250_v46 = vmax.f32 %v896_v21, 0.0  ;;  %v1252_v50 = vmax.f32 %v939_v22, 0.0  ;;  %v2290_v22 = vld [vmem:[%s3129_s23 + $0x18] sm:$0xff] }
 0x117   : > { %v898_v23 = vpop.f32.mrf.mxu0  ;;  %v941_v27 = vpop.f32.mrf.mxu1 }
 0x118   : > { %2597 = vmatmul.mubr.msk.bf16.gmra.mxu0 %vm1312_vm2, %v3142_v48  ;;  %2599 = vmatmul.mubr.msk.bf16.gmra.mxu1 %vm1312_vm2, %v3142_v48  ;;  %v1251_v31 = vmax.f32 %v898_v23, 0.0  ;;  %v1253_v33 = vmax.f32 %v941_v27, 0.0  ;;  %v1282_v56 = vpack.c.bf16 %v1250_v46, %v1218_v45  ;;  %v1284_v58 = vpack.c.bf16 %v1252_v50, %v1220_v49 }
 0x119   : > { %1563 = vmatprep.mubr.bf16.mxu0 %v2882_v0  ;;  %1616 = vmatprep.mubr.bf16.mxu1 %v2882_v0  ;;  %v3162_v34 = vpop.f32.mrf.mxu0  ;;  %v3164_v36 = vpop.f32.mrf.mxu1 }
 0x11a   : > { %v1283_v38 = vpack.c.bf16 %v1251_v31, %v1219_v30  ;;  %v1285_v39 = vpack.c.bf16 %v1253_v33, %v1221_v32  ;;  %v1222_v3 = vmax.f32 %v3162_v34, 0.0  ;;  %v1224_v6 = vmax.f32 %v3164_v36, 0.0  ;;  %2308 = vperm.xlu1 %2736, %v2290_v22  }
 0x11b   : > { %v980_v40 = vpop.f32.mrf.mxu0  ;;  %v1023_v41 = vpop.f32.mrf.mxu1 }
 0x11c   : > { %v1223_v51 = vmax.f32 %v980_v40, 0.0  ;;  %v1225_v53 = vmax.f32 %v1023_v41, 0.0 }
 0x11d   : > { %v982_v42 = vpop.f32.mrf.mxu0  ;;  %v1025_v43 = vpop.f32.mrf.mxu1 }
 0x11e   : > { %v1254_v4 = vmax.f32 %v982_v42, 0.0  ;;  %v1256_v7 = vmax.f32 %v1025_v43, 0.0 }
 0x11f   : > { %v984_v44 = vpop.f32.mrf.mxu0  ;;  %v1027_v47 = vpop.f32.mrf.mxu1 }
 0x120   : > { %2600 = vmatmul.mubr.msk.bf16.vlgmr.msra.gmra.mxu0 %vm1312_vm2, %v3133_v26  ;;  %2602 = vmatmul.mubr.msk.bf16.vlgmr.msra.gmra.mxu1 %vm1312_vm2, %v3133_v26  ;;  %v1255_v52 = vmax.f32 %v984_v44, 0.0  ;;  %v1257_v54 = vmax.f32 %v1027_v47, 0.0  ;;  %v1286_v14 = vpack.c.bf16 %v1254_v4, %v1222_v3  ;;  %v1288_v11 = vpack.c.bf16 %v1256_v7, %v1224_v6 }
 0x121   : > { %1652 = vmatpush1.bf16.msra.mxu0 %v1278_v35  ;;  %1705 = vmatpush1.bf16.msra.mxu1 %v1280_v37  ;;  %v3178_v55 = vpop.f32.mrf.mxu0  ;;  %v3180_v57 = vpop.f32.mrf.mxu1 }
 0x122   : > { %1573 = vmatprep.mubr.bf16.mxu0 %v2882_v0  ;;  %1626 = vmatprep.mubr.bf16.mxu1 %v2882_v0  ;;  %v1287_v59 = vpack.c.bf16 %v1255_v52, %v1223_v51  ;;  %v1289_v60 = vpack.c.bf16 %v1257_v54, %v1225_v53  ;;  %v1226_v27 = vmax.f32 %v3178_v55, 0.0  ;;  %v1228_v30 = vmax.f32 %v3180_v57, 0.0 }
 0x123   : > { %1757 = vmatprep.subr.bf16.mxu0 %v1283_v38  ;;  %1810 = vmatprep.subr.bf16.mxu1 %v1285_v39  ;;  %v1066_v61 = vpop.f32.mrf.mxu0  ;;  %v1109_v62 = vpop.f32.mrf.mxu1 }
 0x124   : > { %v1227_v8 = vmax.f32 %v1066_v61, 0.0  ;;  %v1229_v10 = vmax.f32 %v1109_v62, 0.0 }
 0x125   : > { %v1068_v63 = vpop.f32.mrf.mxu0  ;;  %v1111_v1 = vpop.f32.mrf.mxu1 }
 0x126   : > { %v1258_v28 = vmax.f32 %v1068_v63, 0.0  ;;  %v1260_v31 = vmax.f32 %v1111_v1, 0.0 }
 0x127   : > { %v1070_v2 = vpop.f32.mrf.mxu0  ;;  %v1113_v5 = vpop.f32.mrf.mxu1 }
 0x128   : > { %2601 = vmatmul.mubr.msk.bf16.gmra.mxu0 %vm1312_vm2, %v3142_v48  ;;  %2603 = vmatmul.mubr.msk.bf16.gmra.mxu1 %vm1312_vm2, %v3142_v48  ;;  %v1259_v9 = vmax.f32 %v1070_v2, 0.0  ;;  %v1261_v12 = vmax.f32 %v1113_v5, 0.0  ;;  %v1290_v36 = vpack.c.bf16 %v1258_v28, %v1226_v27  ;;  %v1292_v37 = vpack.c.bf16 %v1260_v31, %v1228_v30 }
 0x129   : > { %1669 = vmatprep.mubr.bf16.mxu0 %v2882_v0  ;;  %1722 = vmatprep.mubr.bf16.mxu1 %v2882_v0  ;;  %v1150_v13 = vpop.f32.mrf.mxu0  ;;  %v1193_v15 = vpop.f32.mrf.mxu1 }
 0x12a   : > { %v1291_v17 = vpack.c.bf16 %v1259_v9, %v1227_v8  ;;  %v1293_v19 = vpack.c.bf16 %v1261_v12, %v1229_v10  ;;  %v1230_v40 = vmax.f32 %v1150_v13, 0.0  ;;  %v1232_v42 = vmax.f32 %v1193_v15, 0.0 }
 0x12b   : > { %v1152_v20 = vpop.f32.mrf.mxu0  ;;  %v1195_v21 = vpop.f32.mrf.mxu1 }
 0x12c   : > { %v1231_v32 = vmax.f32 %v1152_v20, 0.0  ;;  %v1233_v34 = vmax.f32 %v1195_v21, 0.0 }
 0x12d   : > { %v1154_v23 = vpop.f32.mrf.mxu0  ;;  %v1197_v24 = vpop.f32.mrf.mxu1 }
 0x12e   : > { %v1262_v41 = vmax.f32 %v1154_v23, 0.0  ;;  %v1264_v43 = vmax.f32 %v1197_v24, 0.0 }
 0x12f   : > { %v1156_v25 = vpop.f32.mrf.mxu0  ;;  %v1199_v29 = vpop.f32.mrf.mxu1 }
 0x130   : > { %2604 = vmatmul.mubr.msk.bf16.vlgmr.msra.gmra.mxu0 %vm1312_vm2, %v3133_v26  ;;  %2606 = vmatmul.mubr.msk.bf16.vlgmr.msra.gmra.mxu1 %vm1312_vm2, %v3133_v26  ;;  %v1263_v33 = vmax.f32 %v1156_v25, 0.0  ;;  %v1265_v35 = vmax.f32 %v1199_v29, 0.0  ;;  %v1294_v44 = vpack.c.bf16 %v1262_v41, %v1230_v40  ;;  %v1296_v45 = vpack.c.bf16 %v1264_v43, %v1232_v42 }
 0x131   : > { %1758 = vmatpush1.bf16.msra.mxu0 %v1282_v56  ;;  %1811 = vmatpush1.bf16.msra.mxu1 %v1284_v58 }
 0x132   : > { %1679 = vmatprep.mubr.bf16.mxu0 %v2882_v0  ;;  %1732 = vmatprep.mubr.bf16.mxu1 %v2882_v0  ;;  %v1295_v38 = vpack.c.bf16 %v1263_v33, %v1231_v32  ;;  %v1297_v39 = vpack.c.bf16 %v1265_v35, %v1233_v34 }
 0x133   : > { %1863 = vmatprep.subr.bf16.mxu0 %v1287_v59  ;;  %1916 = vmatprep.subr.bf16.mxu1 %v1289_v60 }
 0x138   : > { %2605 = vmatmul.mubr.msk.bf16.gmra.mxu0 %vm1312_vm2, %v3142_v48  ;;  %2607 = vmatmul.mubr.msk.bf16.gmra.mxu1 %vm1312_vm2, %v3142_v48 }
 0x139   : > { %1775 = vmatprep.mubr.bf16.mxu0 %v2882_v0  ;;  %1828 = vmatprep.mubr.bf16.mxu1 %v2882_v0 }
 0x140   : > { %2608 = vmatmul.mubr.msk.bf16.vlgmr.msra.gmra.mxu0 %vm1312_vm2, %v3133_v26  ;;  %2610 = vmatmul.mubr.msk.bf16.vlgmr.msra.gmra.mxu1 %vm1312_vm2, %v3133_v26 }
 0x141   : > { %1864 = vmatpush1.bf16.msra.mxu0 %v1286_v14  ;;  %1917 = vmatpush1.bf16.msra.mxu1 %v1288_v11 }
 0x142   : > { %1785 = vmatprep.mubr.bf16.mxu0 %v2882_v0  ;;  %1838 = vmatprep.mubr.bf16.mxu1 %v2882_v0 }
 0x143   : > { %1969 = vmatprep.subr.bf16.mxu0 %v1291_v17  ;;  %2022 = vmatprep.subr.bf16.mxu1 %v1293_v19 }
 0x148   : > { %2609 = vmatmul.mubr.msk.bf16.gmra.mxu0 %vm1312_vm2, %v3142_v48  ;;  %2611 = vmatmul.mubr.msk.bf16.gmra.mxu1 %vm1312_vm2, %v3142_v48 }
 0x149   : > { %1881 = vmatprep.mubr.bf16.mxu0 %v2882_v0  ;;  %1934 = vmatprep.mubr.bf16.mxu1 %v2882_v0 }
 0x150   : > { %2612 = vmatmul.mubr.msk.bf16.vlgmr.msra.gmra.mxu0 %vm1312_vm2, %v3133_v26  ;;  %2614 = vmatmul.mubr.msk.bf16.vlgmr.msra.gmra.mxu1 %vm1312_vm2, %v3133_v26 }
 0x151   : > { %1970 = vmatpush1.bf16.msra.mxu0 %v1290_v36  ;;  %2023 = vmatpush1.bf16.msra.mxu1 %v1292_v37 }
 0x152   : > { %1891 = vmatprep.mubr.bf16.mxu0 %v2882_v0  ;;  %1944 = vmatprep.mubr.bf16.mxu1 %v2882_v0 }
 0x153   : > { %2075 = vmatprep.subr.bf16.mxu0 %v1295_v38  ;;  %2128 = vmatprep.subr.bf16.mxu1 %v1297_v39 }
 0x158   : > { %2613 = vmatmul.mubr.msk.bf16.gmra.mxu0 %vm1312_vm2, %v3142_v48  ;;  %2615 = vmatmul.mubr.msk.bf16.gmra.mxu1 %vm1312_vm2, %v3142_v48 }
 0x159   : > { %1987 = vmatprep.mubr.bf16.mxu0 %v2882_v0  ;;  %2040 = vmatprep.mubr.bf16.mxu1 %v2882_v0 }
 0x160   : > { %2616 = vmatmul.mubr.msk.bf16.vlgmr.msra.gmra.mxu0 %vm1312_vm2, %v3133_v26  ;;  %2618 = vmatmul.mubr.msk.bf16.vlgmr.msra.gmra.mxu1 %vm1312_vm2, %v3133_v26 }
 0x161   : > { %2076 = vmatpush1.bf16.msra.mxu0 %v1294_v44  ;;  %2129 = vmatpush1.bf16.msra.mxu1 %v1296_v45 }
 0x162   : > { %1997 = vmatprep.mubr.bf16.mxu0 %v2882_v0  ;;  %2050 = vmatprep.mubr.bf16.mxu1 %v2882_v0 }
 0x168   : > { %2617 = vmatmul.mubr.msk.bf16.gmra.mxu0 %vm1312_vm2, %v3142_v48  ;;  %2619 = vmatmul.mubr.msk.bf16.gmra.mxu1 %vm1312_vm2, %v3142_v48 }
 0x169   : > { %2093 = vmatprep.mubr.bf16.mxu0 %v2882_v0  ;;  %2146 = vmatprep.mubr.bf16.mxu1 %v2882_v0 }
 0x170   : > { %2620 = vmatmul.mubr.msk.bf16.vlgmr.msra.gmra.mxu0 %vm1312_vm2, %v3133_v26  ;;  %2622 = vmatmul.mubr.msk.bf16.vlgmr.msra.gmra.mxu1 %vm1312_vm2, %v3133_v26 }
 0x171   : > { %2103 = vmatprep.mubr.bf16.mxu0 %v2882_v0  ;;  %2156 = vmatprep.mubr.bf16.mxu1 %v2882_v0 }
 0x178   : > { %2621 = vmatmul.mubr.msk.bf16.gmra.mxu0 %vm1312_vm2, %v3142_v48  ;;  %2623 = vmatmul.mubr.msk.bf16.gmra.mxu1 %vm1312_vm2, %v3142_v48 }
 0x1c0   : > { %v1353_v46 = vpop.f32.mrf.mxu0  ;;  %v1406_v47 = vpop.f32.mrf.mxu1 }
 0x1c1   : > { %v2167_v49 = vmax.f32 %v1353_v46, %v1406_v47 }
 0x1c2   : > { %v1355_v50 = vpop.f32.mrf.mxu0  ;;  %v1408_v51 = vpop.f32.mrf.mxu1 }
 0x1c3   : > { %v2168_v52 = vmax.f32 %v1355_v50, %v1408_v51 }
 0x1c4   : > { %v1357_v53 = vpop.f32.mrf.mxu0  ;;  %v1410_v54 = vpop.f32.mrf.mxu1 }
 0x1c5   : > { %v2183_v55 = vmax.f32 %v1357_v53, %v1410_v54 }
 0x1c6   : > { %v1359_v26 = vpop.f32.mrf.mxu0  ;;  %v1412_v56 = vpop.f32.mrf.mxu1 }
 0x1c7   : > { %v2184_v57 = vmax.f32 %v1359_v26, %v1412_v56 }
 0x1c8   : > { %v1363_v58 = vpop.f32.mrf.mxu0  ;;  %v1416_v0 = vpop.f32.mrf.mxu1 }
 0x1c9   : > { %v2199_v59 = vmax.f32 %v1363_v58, %v1416_v0 }
 0x1ca   : > { %v1365_v60 = vpop.f32.mrf.mxu0  ;;  %v1418_v61 = vpop.f32.mrf.mxu1 }
 0x1cb   : > { %v2200_v62 = vmax.f32 %v1365_v60, %v1418_v61 }
 0x1cc   : > { %v1367_v63 = vpop.f32.mrf.mxu0  ;;  %v1420_v48 = vpop.f32.mrf.mxu1 }
 0x1cd   : > { %v2215_v1 = vmax.f32 %v1367_v63, %v1420_v48 }
 0x1ce   : > { %v1369_v2 = vpop.f32.mrf.mxu0  ;;  %v1422_v3 = vpop.f32.mrf.mxu1 }
 0x1cf   : > { %v2216_v4 = vmax.f32 %v1369_v2, %v1422_v3 }
 0x1d0   : > { %v1459_v5 = vpop.f32.mrf.mxu0  ;;  %v3249_v7 = vpop.f32.mrf.mxu1 }
 0x1d1   : > { %v3247_v6 = vmax.f32 %v1459_v5, %v2167_v49 }
 0x1d2   : > { %v1461_v8 = vpop.f32.mrf.mxu0  ;;  %v3255_v12 = vpop.f32.mrf.mxu1 }
 0x1d3   : > { %v3253_v10 = vmax.f32 %v1461_v8, %v2168_v52 }
 0x1d4   : > { %v1463_v13 = vpop.f32.mrf.mxu0  ;;  %v3261_v16 = vpop.f32.mrf.mxu1 }
 0x1d5   : > { %v3259_v15 = vmax.f32 %v1463_v13, %v2183_v55 }
 0x1d6   : > { %v1465_v11 = vpop.f32.mrf.mxu0  ;;  %v3267_v19 = vpop.f32.mrf.mxu1 }
 0x1d7   : > { %v3265_v18 = vmax.f32 %v1465_v11, %v2184_v57 }
 0x1d8   : > { %v1469_v20 = vpop.f32.mrf.mxu0  ;;  %v3273_v23 = vpop.f32.mrf.mxu1 }
 0x1d9   : > { %v3271_v22 = vmax.f32 %v1469_v20, %v2199_v59 }
 0x1da   : > { %v1471_v24 = vpop.f32.mrf.mxu0  ;;  %v3279_v28 = vpop.f32.mrf.mxu1 }
 0x1db   : > { %v3277_v27 = vmax.f32 %v1471_v24, %v2200_v62 }
 0x1dc   : > { %v1473_v29 = vpop.f32.mrf.mxu0  ;;  %v3285_v32 = vpop.f32.mrf.mxu1 }
 0x1dd   : > { %v3283_v31 = vmax.f32 %v1473_v29, %v2215_v1 }
 0x1de   : > { %v1475_v33 = vpop.f32.mrf.mxu0  ;;  %v3291_v36 = vpop.f32.mrf.mxu1 }
 0x1df   : > { %v3289_v35 = vmax.f32 %v1475_v33, %v2216_v4 }
 0x1e0   : > { %v1565_v37 = vpop.f32.mrf.mxu0  ;;  %v3295_v39 = vpop.f32.mrf.mxu1 }
 0x1e2   : > { %v1567_v40 = vpop.f32.mrf.mxu0  ;;  %v3297_v41 = vpop.f32.mrf.mxu1 }
 0x1e4   : > { %v1569_v42 = vpop.f32.mrf.mxu0  ;;  %v3299_v43 = vpop.f32.mrf.mxu1 }
 0x1e6   : > { %v1571_v44 = vpop.f32.mrf.mxu0  ;;  %v3301_v45 = vpop.f32.mrf.mxu1 }
 0x1e8   : > { %v1575_v46 = vpop.f32.mrf.mxu0  ;;  %v3303_v47 = vpop.f32.mrf.mxu1 }
 0x1ea   : > { %v1577_v49 = vpop.f32.mrf.mxu0  ;;  %v3305_v50 = vpop.f32.mrf.mxu1 }
 0x1ec   : > { %v3307_v51 = vpop.f32.mrf.mxu0  ;;  %v3309_v52 = vpop.f32.mrf.mxu1 }
 0x1ee   : > { %v3311_v53 = vpop.f32.mrf.mxu0  ;;  %v3313_v54 = vpop.f32.mrf.mxu1 }
 0x1f0   : > { %v1671_v55 = vpop.f32.mrf.mxu0  ;;  %v3315_v26 = vpop.f32.mrf.mxu1 }
 0x1f2   : > { %v1673_v56 = vpop.f32.mrf.mxu0  ;;  %v3317_v57 = vpop.f32.mrf.mxu1 }
 0x1f4   : > { %v1675_v58 = vpop.f32.mrf.mxu0  ;;  %v3319_v0 = vpop.f32.mrf.mxu1 }
 0x1f6   : > { %v1677_v59 = vpop.f32.mrf.mxu0  ;;  %v3321_v60 = vpop.f32.mrf.mxu1 }
 0x1f8   : > { %v3323_v61 = vpop.f32.mrf.mxu0  ;;  %v3325_v62 = vpop.f32.mrf.mxu1 }
 0x1fa   : > { %v3327_v63 = vpop.f32.mrf.mxu0  ;;  %v3329_v48 = vpop.f32.mrf.mxu1 }
 0x1fc   : > { %v3331_v1 = vpop.f32.mrf.mxu0  ;;  %v3333_v2 = vpop.f32.mrf.mxu1 }
 0x1fd   : > { %3584 = vst [vmem:[#allocation14_spill] sm:$0xff] %v3333_v2 }
 0x1fe   : > { %v3335_v3 = vpop.f32.mrf.mxu0  ;;  %v3337_v4 = vpop.f32.mrf.mxu1 }
 0x1ff   : > { %3585 = vst [vmem:[#allocation15_spill] sm:$0xff] %v3335_v3  ;;  %3586 = vst [vmem:[#allocation16_spill] sm:$0xff] %v3337_v4 }
 0x200   : > { %v1777_v5 = vpop.f32.mrf.mxu0  ;;  %v3339_v8 = vpop.f32.mrf.mxu1 }
 0x202   : > { %v1779_v13 = vpop.f32.mrf.mxu0  ;;  %v3341_v11 = vpop.f32.mrf.mxu1 }
 0x204   : > { %v1781_v20 = vpop.f32.mrf.mxu0  ;;  %v3343_v24 = vpop.f32.mrf.mxu1 }
 0x205   : > { %3587 = vst [vmem:[#allocation17_spill] sm:$0xff] %v3343_v24 }
 0x206   : > { %v3345_v29 = vpop.f32.mrf.mxu0  ;;  %v3347_v33 = vpop.f32.mrf.mxu1 }
 0x207   : > { %3588 = vst [vmem:[#allocation18_spill] sm:$0xff] %v3347_v33 }
 0x208   : > { %v3349_v38 = vpop.f32.mrf.mxu0  ;;  %v3351_v34 = vpop.f32.mrf.mxu1 }
 0x209   : > { %3589 = vst [vmem:[#allocation19_spill] sm:$0xff] %v3349_v38  ;;  %3590 = vst [vmem:[#allocation20_spill] sm:$0xff] %v3351_v34  ;;  %v3598_v38 = vmax.f32 %v3249_v7, %v3247_v6 }
 0x20a   : > { %v3353_v30 = vpop.f32.mrf.mxu0  ;;  %v3355_v25 = vpop.f32.mrf.mxu1 }
 0x20b   : > { %3591 = vst [vmem:[#allocation21_spill] sm:$0xff] %v3353_v30  ;;  %3592 = vst [vmem:[#allocation22_spill] sm:$0xff] %v3355_v25  ;;  %v2173_v34 = vmax.f32 %v1565_v37, %v3598_v38  ;;  %v3599_v25 = vmax.f32 %v3255_v12, %v3253_v10  ;;  %v3601_v10 = vmax.f32 %v3267_v19, %v3265_v18 }
 0x20c   : > { %v3357_v21 = vpop.f32.mrf.mxu0  ;;  %v3359_v17 = vpop.f32.mrf.mxu1 }
 0x20d   : > { %3593 = vst [vmem:[#allocation23_spill] sm:$0xff] %v3357_v21  ;;  %3594 = vst [vmem:[#allocation24_spill] sm:$0xff] %v3359_v17  ;;  %v2174_v17 = vmax.f32 %v1567_v40, %v3599_v25  ;;  %v2190_v12 = vmax.f32 %v1571_v44, %v3601_v10 }
 0x20e   : > { %v3361_v14 = vpop.f32.mrf.mxu0  ;;  %v3363_v9 = vpop.f32.mrf.mxu1 }
 0x20f   : > { %3595 = vst [vmem:[#allocation25_spill] sm:$0xff] %v3361_v14  ;;  %3596 = vst [vmem:[#allocation26_spill] sm:$0xff] %v3363_v9  ;;  %v2175_v9 = vmax.f32 %v3295_v39, %v2173_v34  ;;  %v2176_v37 = vmax.f32 %v3297_v41, %v2174_v17  ;;  %v3603_v17 = vmax.f32 %v3279_v28, %v3277_v27 }
 0x210   : > { %v1883_v4 = vpop.f32.mrf.mxu0  ;;  %v3365_v2 = vpop.f32.mrf.mxu1 }
 0x211   : > { %3597 = vst [vmem:[#allocation27_spill] sm:$0xff] %v3365_v2  ;;  %v3600_v2 = vmax.f32 %v3261_v16, %v3259_v15  ;;  %v2231_v25 = vmax.f32 %v1671_v55, %v2175_v9  ;;  %v3602_v15 = vmax.f32 %v3273_v23, %v3271_v22  ;;  %v2232_v39 = vmax.f32 %v1673_v56, %v2176_v37 }
 0x212   : > { %v1885_v33 = vpop.f32.mrf.mxu0  ;;  %v3370_v24 = vpop.f32.mrf.mxu1  ;;  %v2206_v41 = vmax.f32 %v1577_v49, %v3603_v17  ;;  %v2192_v9 = vmax.f32 %v3301_v45, %v2190_v12  ;;  %v3604_v22 = vmax.f32 %v3285_v32, %v3283_v31  ;;  %v3610_v17 = vld [vmem:[#allocation21_spill] sm:$0xff] }
 0x213   : > { %v2189_v3 = vmax.f32 %v1569_v42, %v3600_v2  ;;  %v2205_v16 = vmax.f32 %v1575_v46, %v3602_v15  ;;  %v2177_v19 = vmax.f32 %v3315_v26, %v2231_v25  ;;  %v2178_v27 = vmax.f32 %v3317_v57, %v2232_v39  ;;  %v3608_v15 = vld [vmem:[#allocation19_spill] sm:$0xff]  ;;  %v3609_v39 = vld [vmem:[#allocation14_spill] sm:$0xff] }
 0x214   : > { %v3372_v30 = vpop.f32.mrf.mxu0  ;;  %v3377_v21 = vpop.f32.mrf.mxu1  ;;  %v2221_v23 = vmax.f32 %v3307_v51, %v3604_v22  ;;  %v2240_v28 = vmax.f32 %v1677_v59, %v2192_v9  ;;  %v2208_v45 = vmax.f32 %v3305_v50, %v2206_v41  ;;  %v3605_v26 = vmax.f32 %v3291_v36, %v3289_v35  ;;  %v3613_v22 = vld [vmem:[#allocation16_spill] sm:$0xff] }
 0x215   : > { %v2191_v34 = vmax.f32 %v3299_v43, %v2189_v3  ;;  %v2207_v46 = vmax.f32 %v3303_v47, %v2205_v16  ;;  %v2233_v49 = vmax.f32 %v1777_v5, %v2177_v19  ;;  %v2234_v2 = vmax.f32 %v1779_v13, %v2178_v27 }
 0x216   : > { %v3379_v14 = vpop.f32.mrf.mxu0  ;;  %v3385_v6 = vpop.f32.mrf.mxu1  ;;  %v2223_v57 = vmax.f32 %v3309_v52, %v2221_v23  ;;  %v2248_v59 = vmax.f32 %v3327_v63, %v2208_v45  ;;  %v2194_v5 = vmax.f32 %v3321_v60, %v2240_v28  ;;  %v3606_v60 = vld [vmem:[#allocation15_spill] sm:$0xff]  ;;  %v3615_v28 = vld [vmem:[#allocation20_spill] sm:$0xff] }
 0x217   : > { %v2239_v44 = vmax.f32 %v1675_v58, %v2191_v34  ;;  %v2222_v58 = vmax.f32 %v3311_v53, %v3605_v26  ;;  %v2247_v51 = vmax.f32 %v3323_v61, %v2207_v46  ;;  %v2179_v50 = vmax.f32 %v3339_v8, %v2233_v49  ;;  %v3614_v46 = vld [vmem:[#allocation23_spill] sm:$0xff] }
 0x218   : > { %v3387_v7 = vpop.f32.mrf.mxu0  ;;  %v3393_v38 = vpop.f32.mrf.mxu1  ;;  %v2255_v53 = vmax.f32 %v3331_v1, %v2223_v57  ;;  %v2180_v13 = vmax.f32 %v3341_v11, %v2234_v2  ;;  %v2242_v52 = vmax.f32 %v3345_v29, %v2194_v5  ;;  %v2210_v12 = vmax.f32 %v3329_v48, %v2248_v59  ;;  %v3611_v29 = vld [vmem:[#allocation18_spill] sm:$0xff]  ;;  %v3612_v9 = vld [vmem:[#allocation27_spill] sm:$0xff]  ;;  %v3617_v57 = vld [vmem:[#allocation25_spill] sm:$0xff] }
 0x219   : > { %v2193_v32 = vmax.f32 %v3319_v0, %v2239_v44  ;;  %v2224_v36 = vmax.f32 %v3313_v54, %v2222_v58  ;;  %v2209_v61 = vmax.f32 %v3325_v62, %v2247_v51  ;;  %v2235_v10 = vmax.f32 %v1883_v4, %v2179_v50  ;;  %v3616_v51 = vld [vmem:[#allocation22_spill] sm:$0xff] }
 0x21a   : > { %v3395_v40 = vpop.f32.mrf.mxu0  ;;  %v3401_v42 = vpop.f32.mrf.mxu1  ;;  %v2236_v16 = vmax.f32 %v1885_v33, %v2180_v13  ;;  %v2225_v62 = vmax.f32 %v3609_v39, %v2255_v53  ;;  %v2250_v11 = vmax.f32 %v3610_v17, %v2210_v12  ;;  %v2196_v4 = vmax.f32 %v3611_v29, %v2242_v52  ;;  %v3618_v53 = vld [vmem:[#allocation24_spill] sm:$0xff]  ;;  %v3619_v12 = vld [vmem:[#allocation26_spill] sm:$0xff] }
 0x21b   : > { %v2241_v37 = vmax.f32 %v1781_v20, %v2193_v32  ;;  %v2256_v25 = vmax.f32 %v3606_v60, %v2224_v36  ;;  %v3607_v20 = vld [vmem:[#allocation17_spill] sm:$0xff]  ;;  %v2249_v54 = vmax.f32 %v3608_v15, %v2209_v61  ;;  %v2263_v19 = vmax.f32 %v3612_v9, %v2235_v10 }
 0x21c   : > { %v3406_v18 = vpop.f32.mrf.mxu0  ;;  %v3410_v55 = vpop.f32.mrf.mxu1  ;;  %v2257_v27 = vmax.f32 %v3614_v46, %v2225_v62  ;;  %v2264_v45 = vmax.f32 %v3370_v24, %v2236_v16  ;;  %v2244_v26 = vmax.f32 %v3379_v14, %v2196_v4  ;;  %v2212_v2 = vmax.f32 %v3616_v51, %v2250_v11 }
 0x21d   : > { %v2195_v34 = vmax.f32 %v3607_v20, %v2241_v37  ;;  %v2226_v23 = vmax.f32 %v3613_v22, %v2256_v25  ;;  %v2211_v49 = vmax.f32 %v3615_v28, %v2249_v54 }
 0x21e   : > { %v3416_v43 = vpop.f32.mrf.mxu0  ;;  %v3420_v56 = vpop.f32.mrf.mxu1  ;;  %v2227_v61 = vmax.f32 %v3618_v53, %v2257_v27  ;;  %v2252_v24 = vmax.f32 %v3395_v40, %v2212_v2 }
 0x21f   : > { %v2243_v48 = vmax.f32 %v3372_v30, %v2195_v34  ;;  %v2258_v30 = vmax.f32 %v3617_v57, %v2226_v23  ;;  %v2251_v50 = vmax.f32 %v3387_v7, %v2211_v49 }
 0x220   : > { %v1989_v31 = vpop.f32.mrf.mxu0  ;;  %v2042_v47 = vpop.f32.mrf.mxu1  ;;  %v2272_v54 = vmax.f32 %v3401_v42, %v2252_v24 }
 0x221   : > { %v2181_v58 = vmax.f32 %v1989_v31, %v2263_v19  ;;  %v2197_v5 = vmax.f32 %v3377_v21, %v2243_v48  ;;  %v2198_v31 = vmax.f32 %v3385_v6, %v2244_v26  ;;  %v2228_v60 = vmax.f32 %v3619_v12, %v2258_v30 }
 0x222   : > { %v1991_v3 = vpop.f32.mrf.mxu0  ;;  %v2044_v35 = vpop.f32.mrf.mxu1  ;;  %v2259_v21 = vmax.f32 %v3406_v18, %v2227_v61  ;;  %v2271_v25 = vmax.f32 %v3393_v38, %v2251_v50 }
 0x223   : > { %v2182_v37 = vmax.f32 %v1991_v3, %v2264_v45  ;;  %v2237_v13 = vmax.f32 %v2042_v47, %v2181_v58  ;;  %v2294_v3 = vpop.permute.xlu0 %2293  ;;  %v2260_v6 = vmax.f32 %v3416_v43, %v2228_v60 }
 0x224   : > { %v1993_v0 = vpop.f32.mrf.mxu0  ;;  %v2046_v63 = vpop.f32.mrf.mxu1  ;;  %v2229_v17 = vmax.f32 %v3410_v55, %v2259_v21 }
 0x225   : > { %v2245_v52 = vmax.f32 %v1993_v0, %v2197_v5  ;;  %v2238_v20 = vmax.f32 %v2044_v35, %v2182_v37  ;;  %v2230_v43 = vmax.f32 %v3420_v56, %v2260_v6 }
 0x226   : > { %v1995_v8 = vpop.f32.mrf.mxu0  ;;  %v3442_v1 = vpop.f32.mrf.mxu1 }
 0x227   : > { %v2246_v34 = vmax.f32 %v1995_v8, %v2198_v31  ;;  %v2267_v0 = vmax.f32 %v2046_v63, %v2245_v52 }
 0x228   : > { %v1999_v41 = vpop.f32.mrf.mxu0  ;;  %v3449_v44 = vpop.f32.mrf.mxu1 }
 0x229   : > { %v2213_v16 = vmax.f32 %v1999_v41, %v2271_v25  ;;  %v2268_v35 = vmax.f32 %v3442_v1, %v2246_v34  ;;  %v2299_v41 = vpop.permute.xlu0 %2298 }
 0x22a   : > { %v2001_v33 = vpop.f32.mrf.mxu0  ;;  %v3456_v32 = vpop.f32.mrf.mxu1 }
 0x22b   : > { %v2214_v11 = vmax.f32 %v2001_v33, %v2272_v54  ;;  %v2253_v19 = vmax.f32 %v3449_v44, %v2213_v16  ;;  %v2304_v44 = vpop.permute.xlu1 %2303 }
 0x22c   : > { %v2003_v59 = vpop.f32.mrf.mxu0  ;;  %v3462_v36 = vpop.f32.mrf.mxu1 }
 0x22d   : > { %v2261_v9 = vmax.f32 %v2003_v59, %v2229_v17  ;;  %v2254_v1 = vmax.f32 %v3456_v32, %v2214_v11 }
 0x22e   : > { %v2005_v14 = vpop.f32.mrf.mxu0  ;;  %v3467_v10 = vpop.f32.mrf.mxu1 }
 0x22f   : > { %v2262_v46 = vmax.f32 %v2005_v14, %v2230_v43  ;;  %v2275_v58 = vmax.f32 %v3462_v36, %v2261_v9  ;;  %v2309_v21 = vpop.permute.xlu1 %2308 }
 0x230   : > { %v2095_v7 = vpop.f32.mrf.mxu0  ;;  %v2148_v40 = vpop.f32.mrf.mxu1 }
 0x231   : > { %v2265_v15 = vmax.f32 %v2095_v7, %v2237_v13  ;;  %v2276_v5 = vmax.f32 %v3467_v10, %v2262_v46 }
 0x232   : > { %v2097_v47 = vpop.f32.mrf.mxu0  ;;  %v2150_v18 = vpop.f32.mrf.mxu1 }
 0x233   : > { %v2279_v39 = vmax.f32 %v2148_v40, %v2265_v15  ;;  %v2266_v62 = vmax.f32 %v2097_v47, %v2238_v20 }
 0x234   : > { %v2099_v38 = vpop.f32.mrf.mxu0  ;;  %v2152_v4 = vpop.f32.mrf.mxu1 }
 0x235   : > { %v2280_v8 = vmax.f32 %v2150_v18, %v2266_v62  ;;  %v2269_v29 = vmax.f32 %v2099_v38, %v2267_v0  ;;  %v2311_v42 = vadd.f32 %v2294_v3, %v2279_v39 }
 0x236   : > { %v2101_v63 = vpop.f32.mrf.mxu0  ;;  %v2154_v22 = vpop.f32.mrf.mxu1 }
 0x237   : > { %v2281_v48 = vmax.f32 %v2152_v4, %v2269_v29  ;;  %v2270_v55 = vmax.f32 %v2101_v63, %v2268_v35  ;;  %v2312_v23 = vadd.f32 %v2294_v3, %v2280_v8  ;;  %v2319_v27 = vmax.f32 %v2311_v42, 0.0 }
 0x238   : > { %v2105_v33 = vpop.f32.mrf.mxu0  ;;  %v2158_v45 = vpop.f32.mrf.mxu1 }
 0x239   : > { %v2282_v28 = vmax.f32 %v2154_v22, %v2270_v55  ;;  %v2320_v56 = vmax.f32 %v2312_v23, 0.0  ;;  %v2273_v49 = vmax.f32 %v2105_v33, %v2253_v19  ;;  %v2313_v26 = vadd.f32 %v2299_v41, %v2281_v48 }
 0x23a   : > { %v2107_v51 = vpop.f32.mrf.mxu0  ;;  %v2160_v59 = vpop.f32.mrf.mxu1 }
 0x23b   : > { %v2639_v2 = vpack.c.bf16 %v2320_v56, %v2319_v27  ;;  %v2283_v57 = vmax.f32 %v2158_v45, %v2273_v49  ;;  %v2274_v30 = vmax.f32 %v2107_v51, %v2254_v1  ;;  %v2314_v32 = vadd.f32 %v2299_v41, %v2282_v28 }
 0x23c   : > { %v2321_v50 = vmax.f32 %v2313_v26, 0.0  ;;  %v2109_v37 = vpop.f32.mrf.mxu0  ;;  %v2162_v24 = vpop.f32.mrf.mxu1 }
 0x23d   : > { %2351 = vst [vmem:[%s3486_s12] sm:$0xff] %v2639_v2  ;;  %v2284_v36 = vmax.f32 %v2160_v59, %v2274_v30  ;;  %v2322_v53 = vmax.f32 %v2314_v32, 0.0  ;;  %v2277_v61 = vmax.f32 %v2109_v37, %v2275_v58  ;;  %v2315_v14 = vadd.f32 %v2304_v44, %v2283_v57 }
 0x23e   : > { %v2111_v31 = vpop.f32.mrf.mxu0  ;;  %v2164_v60 = vpop.f32.mrf.mxu1 }
 0x23f   : > { %v2640_v13 = vpack.c.bf16 %v2322_v53, %v2321_v50  ;;  %v2285_v52 = vmax.f32 %v2162_v24, %v2277_v61  ;;  %v2278_v10 = vmax.f32 %v2111_v31, %v2276_v5  ;;  %v2316_v12 = vadd.f32 %v2304_v44, %v2284_v36 }
 0x240   : > { %v2323_v3 = vmax.f32 %v2315_v14, 0.0 }
 0x241   : > { %2352 = vst [vmem:[%s3486_s12 + $0x8] sm:$0xff] %v2640_v13  ;;  %v2286_v7 = vmax.f32 %v2164_v60, %v2278_v10  ;;  %v2324_v25 = vmax.f32 %v2316_v12, 0.0  ;;  %v2317_v20 = vadd.f32 %v2309_v21, %v2285_v52 }
 0x243   : > { %v2641_v34 = vpack.c.bf16 %v2324_v25, %v2323_v3  ;;  %v2318_v15 = vadd.f32 %v2309_v21, %v2286_v7  ;;  %v2325_v40 = vmax.f32 %v2317_v20, 0.0 }
 0x245   : > { %2353 = vst [vmem:[%s3486_s12 + $0x10] sm:$0xff] %v2641_v34  ;;  %v2326_v54 = vmax.f32 %v2318_v15, 0.0 }
 0x247   : > { %v2642_v6 = vpack.c.bf16 %v2326_v54, %v2325_v40 }
 0x249   : > { %2354 = vst [vmem:[%s3486_s12 + $0x18] sm:$0xff] %v2642_v6 }
 0x24a   : > { %2785 = shalt.err (!%p2782_p10)
}
 0x24b   : > { %s2786_s17 = scalar_lea.hbm %s3498_s7, 512  ;;  %s2790_s23 = scalar_lea.hbm %s3564_s4, 4096 }
 0x24c   : > { %p2787_p11 = scmp.ne.s32.totalorder %s3498_s7, %s2786_s17  ;;  %p2791_p0 = scmp.lt.s32.totalorder %s3498_s7, %s3564_s4 }
 0x24d   : > { %p2792_p1 = scmp.lt.s32.totalorder %s2790_s23, %s2786_s17 }
 0x24e   : > { %p2788_p12 = pnand %p2787_p11, %p2974_p5 }
 0x24f   : > { %p2793_p2 = por %p2792_p1, %p2791_p0 }
 0x250   : > { %p2789_p13 = pneg %p2788_p12 }
 0x252   : > { %p2794_p3 = pnand %p2793_p2, %p2789_p13 }
 0x254   : > { %2797 = shalt.err (!%p2794_p3)
}
 0x255   : > { %s2884_s29 = smov 128   ;;  %s2885_s5 = smov 256  }
 0x256   : > { %s2886_s12 = smov 8  }
 0x257   : > { %2644 = dma.vmem_to_hbm [thread:$0]  (%p2974_p5), %s3492_s25, 512, %s3498_s7, %s3503_s8, %s2884_s29, %s2885_s5, %s2886_s12  }
 0x258 PF: > { %p2650_p4 = scmp.ge.s32.totalorder %s2880_s24, 2  ;;  %s2389_s20 = sand.u32 1, %s2844_s15  }
 0x259   : > { %s2390_s13 = scalar_lea.sflag [#allocation3], %s2389_s20 }
 0x25a   : > { %p2647_p6 = pnand %p2650_p4, %p2981_p7 }
 0x25c   : > { %p2648_p8 = pneg %p2647_p6 }
 0x25e   : > { %2839 = dma.done.wait (%p2648_p8), %s2390_s13, 512  }
 0x25f   : > { %2841 = vsyncadd (%p2648_p8), %s2390_s13, 4294966784  ;;  %s17_s24 = sadd.s32 1, %s2880_s24   ;;  %s3621_s19 = sld [smem:[#allocation5_spill]] }
 0x260   : > { %p14_p9 = scmp.ge.s32.totalorder %s17_s24, 10   ;;  %s3622_s17 = sld [smem:[#allocation13_spill]] }
 0x261   : > { %s3623_s18 = sld [smem:[#allocation6_spill]]  ;;  %s3629_s15 = smov %s2848_s16 }
 0x262   : > { %s3624_s30 = sld [smem:[#allocation7_spill]] }
 0x263   : > { %s3625_s20 = sld [smem:[#allocation8_spill]] }
 0x264   : > { %s3626_s21 = sld [smem:[#allocation9_spill]]  ;;  %16 = sbr.rel (!%p14_p9) target bundleno = 6 (0x6), region = 80 }
 0x265   : > { %s3627_s22 = sld [smem:[#allocation10_spill]]  ;;  %s3630_s16 = smov %s3621_s19 }
 0x266   : > { %s3628_s23 = sld [smem:[#allocation12_spill]] }
 0x268   : > { %s3631_s19 = smov %s3624_s30 }
 0x269   :  { %2395 = vsyncpa [#allocation3], 1 }
 0x26a   :  { %2397 = vsyncpa [#allocation3 + $0x1], 1 }

</bundles_post_ra>
